<compile_context>
chip_gen: v7x
topology: tpu7x:2x2x1
jax: 0.10.0
libtpu: 0.0.40
codegen_flags: <defaults>
</compile_context>

<pallas_src>
import functools

import numpy as np
import jax
import jax.numpy as jnp
from jax.experimental import pallas as pl
from jax.experimental.pallas import tpu as pltpu

# ----------------------------- config (small) --------------------------------
MODEL_DIM = 32
HEADS = 4
HEAD_DIM = MODEL_DIM // HEADS
PWFF_MID = 64
N_BLOCKS = 2
EMBED_SIZE = 50
EMBED_PAD = ((EMBED_SIZE + 7) // 8) * 8          # pad table rows to sublane multiple
PAD_IDX = 0
SEQ = 8
BATCH = 2
EPS = 1e-6
SQRT_D = float(np.sqrt(MODEL_DIM))


# ----------------------------- kernel helpers --------------------------------
def _layernorm(x, gamma, beta):
    # torch: mean over last dim, unbiased std (/(D-1)), eps added to std.
    d = x.shape[-1]
    mean = jnp.mean(x, axis=-1, keepdims=True)
    var = jnp.sum((x - mean) ** 2, axis=-1, keepdims=True) / (d - 1)
    std = jnp.sqrt(var) + EPS
    return gamma * ((x - mean) / std) + beta


# ----------------------------- fused kernel ----------------------------------
def _fused_encoder_kernel(
    tok_ref, pos_ref, mask_ref,
    embed_ref, gb_ref, bb1_ref, wqkvo_ref, w1_ref, w2_ref,
    o_ref, *, batch, seq, heads, head_dim, n_blocks, embed_rows,
):
    d = heads * head_dim
    bs = batch * seq

    # ---- ScaledEmbedding (gather via one-hot matmul, padding row is zero) ----
    tok = tok_ref[...]                                           # (BS, 1) int32
    cols = jax.lax.broadcasted_iota(jnp.int32, (bs, embed_rows), 1)
    onehot = (tok == cols).astype(jnp.float32)                   # (BS, E)
    x = jnp.dot(onehot, embed_ref[...], preferred_element_type=jnp.float32)
    x = x * SQRT_D + pos_ref[...]                                # (BS, D)

    # ---- top-level LayerNorm (dropout == identity in eval mode) ----
    gb = gb_ref[...]                                             # (2 + 5*nb, D)
    bb1_all = bb1_ref[...]                                       # (nb, PWFF_MID)
    x = _layernorm(x, gb[0:1, :], gb[1:2, :])

    # key-padding mask broadcast to (B, S, S); 1 = keep, 0 = pad
    mask3 = jnp.broadcast_to(mask_ref[...], (batch, seq, seq))

    # lane-index based head masks (VPU) instead of 8-lane slices/concat (XLU)
    lane = jax.lax.broadcasted_iota(jnp.int32, (1, d), 1)        # (1, D)

    for blk in range(n_blocks):                                  # static unroll
        base = 2 + 5 * blk
        g1 = gb[base + 0:base + 1, :]
        b1 = gb[base + 1:base + 2, :]
        g2 = gb[base + 2:base + 3, :]
        b2 = gb[base + 3:base + 4, :]
        bb2 = gb[base + 4:base + 5, :]
        bb1 = bb1_all[blk:blk + 1, :]

        # ----- multi-head attention -----
        q = jnp.dot(x, wqkvo_ref[4 * blk + 0], preferred_element_type=jnp.float32)
        k = jnp.dot(x, wqkvo_ref[4 * blk + 1], preferred_element_type=jnp.float32)
        v = jnp.dot(x, wqkvo_ref[4 * blk + 2], preferred_element_type=jnp.float32)
        k3 = k.reshape(batch, seq, d)

        attn3 = jnp.zeros((batch, seq, d), jnp.float32)
        for h in range(heads):                                   # static unroll
            hm = ((lane >= h * head_dim) & (lane < (h + 1) * head_dim))
            hm = hm.astype(jnp.float32)                          # (1, D) 0/1 mask
            qh3 = (q * hm).reshape(batch, seq, d)
            vh3 = (v * hm).reshape(batch, seq, d)
            # q_h @ k_h^T  ==  (q*mask_h) @ k^T  (zeros kill other heads' dims)
            s = jnp.einsum('bqd,bkd->bqk', qh3, k3,
                           preferred_element_type=jnp.float32) / head_dim
            s = jnp.where(mask3 == 0.0, -1e9, s)                 # masked_fill
            s = s - jnp.max(s, axis=-1, keepdims=True)
            e = jnp.exp(s)
            p = e / jnp.sum(e, axis=-1, keepdims=True)           # softmax
            # p_h @ (v*mask_h) lands directly in head-h columns -> just sum.
            attn3 = attn3 + jnp.einsum('bqk,bkd->bqd', p, vh3,
                                       preferred_element_type=jnp.float32)
        attn = jnp.dot(attn3.reshape(bs, d), wqkvo_ref[4 * blk + 3],
                       preferred_element_type=jnp.float32)

        # residual (dropout == identity) + LayerNorm 1
        x = _layernorm(attn + x, g1, b1)

        # ----- position-wise feed forward -----
        h1 = jnp.dot(x, w1_ref[blk], preferred_element_type=jnp.float32) + bb1
        h1 = jnp.maximum(h1, 0.0)
        h2 = jnp.dot(h1, w2_ref[blk], preferred_element_type=jnp.float32) + bb2

        # residual + LayerNorm 2
        x = _layernorm(h2 + x, g2, b2)

    o_ref[...] = x                                               # one dense slab


# ----------------------------- parameter init --------------------------------
def _glorot_uniform(key, fan_in, fan_out):
    r = np.sqrt(3.0 / ((fan_in + fan_out) / 2.0))
    return jax.random.uniform(key, (fan_in, fan_out), jnp.float32, -r, r)


def init_params(key):
    keys = iter(jax.random.split(key, 1 + 6 * N_BLOCKS))
    # ScaledEmbedding: xavier-uniform table, padding row zeroed, rows padded
    # to a sublane multiple (extra rows are exact zeros, never selected).
    r = np.sqrt(6.0 / (EMBED_SIZE + MODEL_DIM))
    embed = jax.random.uniform(next(keys), (EMBED_SIZE, MODEL_DIM), jnp.float32, -r, r)
    embed = embed.at[PAD_IDX].set(0.0)
    embed = jnp.concatenate(
        [embed, jnp.zeros((EMBED_PAD - EMBED_SIZE, MODEL_DIM), jnp.float32)], axis=0)

    # pack all D-wide LN gammas/betas and biases into one (2 + 5*NB, D) block:
    # rows = [ln_g, ln_b] + per block [g1, b1, g2, b2, bb2]
    gb_rows = [jnp.ones((MODEL_DIM,), jnp.float32),
               jnp.zeros((MODEL_DIM,), jnp.float32)]
    bb1_rows, wqkvo_mats, w1s, w2s = [], [], [], []
    for _ in range(N_BLOCKS):
        wq = _glorot_uniform(next(keys), MODEL_DIM, MODEL_DIM)
        wk = _glorot_uniform(next(keys), MODEL_DIM, MODEL_DIM)
        wv = _glorot_uniform(next(keys), MODEL_DIM, MODEL_DIM)
        wo = _glorot_uniform(next(keys), MODEL_DIM, MODEL_DIM)
        w1 = _glorot_uniform(next(keys), MODEL_DIM, PWFF_MID)
        w2 = _glorot_uniform(next(keys), PWFF_MID, MODEL_DIM)
        gb_rows += [jnp.ones((MODEL_DIM,), jnp.float32),    # g1
                    jnp.zeros((MODEL_DIM,), jnp.float32),   # b1
                    jnp.ones((MODEL_DIM,), jnp.float32),    # g2
                    jnp.zeros((MODEL_DIM,), jnp.float32),   # b2
                    jnp.zeros((MODEL_DIM,), jnp.float32)]   # bb2 (pwff layer2 bias)
        bb1_rows.append(jnp.zeros((PWFF_MID,), jnp.float32))
        wqkvo_mats += [wq, wk, wv, wo]
        w1s.append(w1)
        w2s.append(w2)

    return {
        "embed": embed,                              # (EMBED_PAD, D)
        "gb": jnp.stack(gb_rows, axis=0),            # (2 + 5*NB, D)
        "bb1": jnp.stack(bb1_rows, axis=0),          # (NB, PWFF_MID)
        "wqkvo": jnp.stack(wqkvo_mats, axis=0),      # (4*NB, D, D)
        "w1": jnp.stack(w1s, axis=0),                # (NB, D, PWFF_MID)
        "w2": jnp.stack(w2s, axis=0),                # (NB, PWFF_MID, D)
    }


# ----------------------------- forward (wrapper) ------------------------------
def encoder_forward(tokens, pos_enc, src_mask, params):
    """tokens (B,S) int, pos_enc (B,S,D) f32, src_mask (B,1,S) f32."""
    B, S = tokens.shape
    D = MODEL_DIM
    args = (
        tokens.reshape(B * S, 1).astype(jnp.int32),        # (BS, 1)
        pos_enc.reshape(B * S, D).astype(jnp.float32),      # (BS, D)
        src_mask.astype(jnp.float32),                       # (B, 1, S)
        params["embed"], params["gb"], params["bb1"],
        params["wqkvo"], params["w1"], params["w2"],
    )
    kern = functools.partial(
        _fused_encoder_kernel, batch=B, seq=S, heads=HEADS, head_dim=HEAD_DIM,
        n_blocks=N_BLOCKS, embed_rows=EMBED_PAD)
    in_specs = [
        pl.BlockSpec(a.shape, lambda i, n=a.ndim: (0,) * n) for a in args
    ]
    out = pl.pallas_call(
        kern,
        out_shape=jax.ShapeDtypeStruct((B * S, D), jnp.float32),
        grid=(1,),                                            # whole batch, one step
        in_specs=in_specs,
        out_specs=pl.BlockSpec((B * S, D), lambda i: (0, 0)),
        compiler_params=pltpu.CompilerParams(
            dimension_semantics=("arbitrary",)),
    )(*args)
    # TODO(synk): dropout layers are stochastic in train mode; implemented as
    # identity (eval-mode semantics).
    return out.reshape(B, S, D)


# ----------------------------- main ------------------------------------------
if __name__ == "__main__":
    key = jax.random.PRNGKey(0)
    pkey, tkey = jax.random.split(key)
    params = init_params(pkey)

    # deterministic small inputs
    src_lens = [SEQ, SEQ - 2]
    tokens_np = np.array(
        jax.random.randint(tkey, (BATCH, SEQ), 1, EMBED_SIZE), dtype=np.int32)
    for b, L in enumerate(src_lens):
        tokens_np[b, L:] = PAD_IDX

    # sinusoidal positional encodings, padded per-sequence (pad_sequence semantics)
    pos_table = np.zeros((MODEL_DIM, MODEL_DIM), np.float32)
    pos = np.arange(MODEL_DIM)
    for i in range(MODEL_DIM // 2):
        denom = 10000 ** (2 * i / MODEL_DIM)
        pos_table[:, 2 * i] = np.sin(pos / denom)
        pos_table[:, 2 * i + 1] = np.cos(pos / denom)
    pos_enc_np = np.zeros((BATCH, SEQ, MODEL_DIM), np.float32)
    src_mask_np = np.zeros((BATCH, 1, SEQ), np.float32)
    for b, L in enumerate(src_lens):
        pos_enc_np[b, :L, :] = pos_table[:L, :]
        src_mask_np[b, 0, :L] = 1.0

    tokens = jnp.asarray(tokens_np)
    pos_enc = jnp.asarray(pos_enc_np)
    src_mask = jnp.asarray(src_mask_np)

    out = encoder_forward(tokens, pos_enc, src_mask, params)
    out = jax.block_until_ready(out)

    assert out.shape == (BATCH, SEQ, MODEL_DIM)
    assert bool(jnp.all(jnp.isfinite(out)))
    print("KERNEL_OK")
</pallas_src>

<mosaic_0001>
module attributes {stable_mosaic.version = 11 : i64} {
  func.func @_fused_encoder_kernel(%arg0: i32, %arg1: memref<16x1xi32, #tpu.memory_space<vmem>>, %arg2: memref<16x32xf32, #tpu.memory_space<vmem>>, %arg3: memref<2x1x8xf32, #tpu.memory_space<vmem>>, %arg4: memref<56x32xf32, #tpu.memory_space<vmem>>, %arg5: memref<12x32xf32, #tpu.memory_space<vmem>>, %arg6: memref<2x64xf32, #tpu.memory_space<vmem>>, %arg7: memref<8x32x32xf32, #tpu.memory_space<vmem>>, %arg8: memref<2x32x64xf32, #tpu.memory_space<vmem>>, %arg9: memref<2x64x32xf32, #tpu.memory_space<vmem>>, %arg10: memref<16x32xf32, #tpu.memory_space<vmem>>) attributes {dimension_semantics = [#tpu.dimension_semantics<arbitrary>], iteration_bounds = array<i64: 1>, scalar_prefetch = 0 : i64, scratch_operands = 0 : i64, tpu.core_type = #tpu.core_type<tc>, window_params = [{pipeline_mode = #tpu.pipeline_mode<synchronous>, transform_indices = @transform_0, window_bounds = array<i64: 16, 1>}, {pipeline_mode = #tpu.pipeline_mode<synchronous>, transform_indices = @transform_1, window_bounds = array<i64: 16, 32>}, {pipeline_mode = #tpu.pipeline_mode<synchronous>, transform_indices = @transform_2, window_bounds = array<i64: 2, 1, 8>}, {pipeline_mode = #tpu.pipeline_mode<synchronous>, transform_indices = @transform_3, window_bounds = array<i64: 56, 32>}, {pipeline_mode = #tpu.pipeline_mode<synchronous>, transform_indices = @transform_4, window_bounds = array<i64: 12, 32>}, {pipeline_mode = #tpu.pipeline_mode<synchronous>, transform_indices = @transform_5, window_bounds = array<i64: 2, 64>}, {pipeline_mode = #tpu.pipeline_mode<synchronous>, transform_indices = @transform_6, window_bounds = array<i64: 8, 32, 32>}, {pipeline_mode = #tpu.pipeline_mode<synchronous>, transform_indices = @transform_7, window_bounds = array<i64: 2, 32, 64>}, {pipeline_mode = #tpu.pipeline_mode<synchronous>, transform_indices = @transform_8, window_bounds = array<i64: 2, 64, 32>}, {pipeline_mode = #tpu.pipeline_mode<synchronous>, transform_indices = @transform_9, window_bounds = array<i64: 16, 32>}]} {
    %c0 = arith.constant 0 : index
    %c0_0 = arith.constant 0 : index
    %0 = vector.load %arg1[%c0, %c0_0] : memref<16x1xi32, #tpu.memory_space<vmem>>, vector<16x1xi32>
    %1 = tpu.iota {dimensions = array<i32: 1>} : vector<16x56xi32>
    %2 = vector.broadcast %0 : vector<16x1xi32> to vector<16x56xi32>
    %3 = arith.cmpi eq, %2, %1 : vector<16x56xi32>
    %4 = arith.extui %3 : vector<16x56xi1> to vector<16x56xi32>
    %5 = arith.sitofp %4 : vector<16x56xi32> to vector<16x56xf32>
    %c0_1 = arith.constant 0 : index
    %c0_2 = arith.constant 0 : index
    %6 = vector.load %arg4[%c0_1, %c0_2] : memref<56x32xf32, #tpu.memory_space<vmem>>, vector<56x32xf32>
    %cst = arith.constant dense<0.000000e+00> : vector<16x32xf32>
    %7 = tpu.matmul %5, %6, %cst {dimension_numbers = #tpu.dot_dimension_numbers<[1], [0], [0], [1], [0, 0, 1, 1], [], []>} : vector<16x56xf32>, vector<56x32xf32>, vector<16x32xf32> -> vector<16x32xf32>
    %cst_3 = arith.constant 5.65685415 : f32
    %8 = vector.broadcast %cst_3 : f32 to vector<16x32xf32>
    %9 = arith.mulf %7, %8 : vector<16x32xf32>
    %c0_4 = arith.constant 0 : index
    %c0_5 = arith.constant 0 : index
    %10 = vector.load %arg2[%c0_4, %c0_5] : memref<16x32xf32, #tpu.memory_space<vmem>>, vector<16x32xf32>
    %11 = arith.addf %9, %10 : vector<16x32xf32>
    %c0_6 = arith.constant 0 : index
    %c0_7 = arith.constant 0 : index
    %12 = vector.load %arg5[%c0_6, %c0_7] : memref<12x32xf32, #tpu.memory_space<vmem>>, vector<12x32xf32>
    %c0_8 = arith.constant 0 : index
    %c0_9 = arith.constant 0 : index
    %13 = vector.load %arg6[%c0_8, %c0_9] : memref<2x64xf32, #tpu.memory_space<vmem>>, vector<2x64xf32>
    %14 = vector.extract_strided_slice %12 {offsets = [0, 0], sizes = [1, 32], strides = [1, 1]} : vector<12x32xf32> to vector<1x32xf32>
    %15 = vector.extract_strided_slice %12 {offsets = [1, 0], sizes = [1, 32], strides = [1, 1]} : vector<12x32xf32> to vector<1x32xf32>
    %cst_10 = arith.constant dense<0.000000e+00> : vector<16xf32>
    %16 = vector.multi_reduction <add>, %11, %cst_10 [1] : vector<16x32xf32> to vector<16xf32>
    %17 = vector.shape_cast %16 : vector<16xf32> to vector<16x1xf32>
    %cst_11 = arith.constant 3.200000e+01 : f32
    %18 = vector.broadcast %cst_11 : f32 to vector<16x1xf32>
    %19 = arith.divf %17, %18 : vector<16x1xf32>
    %20 = vector.broadcast %19 : vector<16x1xf32> to vector<16x32xf32>
    %21 = arith.subf %11, %20 : vector<16x32xf32>
    %22 = arith.mulf %21, %21 : vector<16x32xf32>
    %cst_12 = arith.constant dense<0.000000e+00> : vector<16xf32>
    %23 = vector.multi_reduction <add>, %22, %cst_12 [1] : vector<16x32xf32> to vector<16xf32>
    %24 = vector.shape_cast %23 : vector<16xf32> to vector<16x1xf32>
    %cst_13 = arith.constant 3.100000e+01 : f32
    %25 = vector.broadcast %cst_13 : f32 to vector<16x1xf32>
    %26 = arith.divf %24, %25 : vector<16x1xf32>
    %27 = math.sqrt %26 : vector<16x1xf32>
    %cst_14 = arith.constant 9.99999997E-7 : f32
    %28 = vector.broadcast %cst_14 : f32 to vector<16x1xf32>
    %29 = arith.addf %27, %28 : vector<16x1xf32>
    %30 = vector.broadcast %19 : vector<16x1xf32> to vector<16x32xf32>
    %31 = arith.subf %11, %30 : vector<16x32xf32>
    %32 = vector.broadcast %29 : vector<16x1xf32> to vector<16x32xf32>
    %33 = arith.divf %31, %32 : vector<16x32xf32>
    %34 = vector.broadcast %14 : vector<1x32xf32> to vector<16x32xf32>
    %35 = arith.mulf %34, %33 : vector<16x32xf32>
    %36 = vector.broadcast %15 : vector<1x32xf32> to vector<16x32xf32>
    %37 = arith.addf %35, %36 : vector<16x32xf32>
    %c0_15 = arith.constant 0 : index
    %c0_16 = arith.constant 0 : index
    %c0_17 = arith.constant 0 : index
    %38 = vector.load %arg3[%c0_15, %c0_16, %c0_17] : memref<2x1x8xf32, #tpu.memory_space<vmem>>, vector<2x1x8xf32>
    %39 = vector.shape_cast %38 : vector<2x1x8xf32> to vector<2x1x8xf32>
    %40 = vector.broadcast %39 : vector<2x1x8xf32> to vector<2x8x8xf32>
    %41 = tpu.iota {dimensions = array<i32: 1>} : vector<1x32xi32>
    %42 = vector.extract_strided_slice %12 {offsets = [2, 0], sizes = [1, 32], strides = [1, 1]} : vector<12x32xf32> to vector<1x32xf32>
    %43 = vector.extract_strided_slice %12 {offsets = [3, 0], sizes = [1, 32], strides = [1, 1]} : vector<12x32xf32> to vector<1x32xf32>
    %44 = vector.extract_strided_slice %12 {offsets = [4, 0], sizes = [1, 32], strides = [1, 1]} : vector<12x32xf32> to vector<1x32xf32>
    %45 = vector.extract_strided_slice %12 {offsets = [5, 0], sizes = [1, 32], strides = [1, 1]} : vector<12x32xf32> to vector<1x32xf32>
    %46 = vector.extract_strided_slice %12 {offsets = [6, 0], sizes = [1, 32], strides = [1, 1]} : vector<12x32xf32> to vector<1x32xf32>
    %47 = vector.extract_strided_slice %13 {offsets = [0, 0], sizes = [1, 64], strides = [1, 1]} : vector<2x64xf32> to vector<1x64xf32>
    %c0_18 = arith.constant 0 : index
    %c0_19 = arith.constant 0 : index
    %c0_20 = arith.constant 0 : index
    %48 = vector.load %arg7[%c0_18, %c0_19, %c0_20] : memref<8x32x32xf32, #tpu.memory_space<vmem>>, vector<1x32x32xf32>
    %49 = vector.shape_cast %48 : vector<1x32x32xf32> to vector<32x32xf32>
    %cst_21 = arith.constant dense<0.000000e+00> : vector<16x32xf32>
    %50 = tpu.matmul %37, %49, %cst_21 {dimension_numbers = #tpu.dot_dimension_numbers<[1], [0], [0], [1], [0, 0, 1, 1], [], []>} : vector<16x32xf32>, vector<32x32xf32>, vector<16x32xf32> -> vector<16x32xf32>
    %c1 = arith.constant 1 : index
    %c0_22 = arith.constant 0 : index
    %c0_23 = arith.constant 0 : index
    %51 = vector.load %arg7[%c1, %c0_22, %c0_23] : memref<8x32x32xf32, #tpu.memory_space<vmem>>, vector<1x32x32xf32>
    %52 = vector.shape_cast %51 : vector<1x32x32xf32> to vector<32x32xf32>
    %cst_24 = arith.constant dense<0.000000e+00> : vector<16x32xf32>
    %53 = tpu.matmul %37, %52, %cst_24 {dimension_numbers = #tpu.dot_dimension_numbers<[1], [0], [0], [1], [0, 0, 1, 1], [], []>} : vector<16x32xf32>, vector<32x32xf32>, vector<16x32xf32> -> vector<16x32xf32>
    %c2 = arith.constant 2 : index
    %c0_25 = arith.constant 0 : index
    %c0_26 = arith.constant 0 : index
    %54 = vector.load %arg7[%c2, %c0_25, %c0_26] : memref<8x32x32xf32, #tpu.memory_space<vmem>>, vector<1x32x32xf32>
    %55 = vector.shape_cast %54 : vector<1x32x32xf32> to vector<32x32xf32>
    %cst_27 = arith.constant dense<0.000000e+00> : vector<16x32xf32>
    %56 = tpu.matmul %37, %55, %cst_27 {dimension_numbers = #tpu.dot_dimension_numbers<[1], [0], [0], [1], [0, 0, 1, 1], [], []>} : vector<16x32xf32>, vector<32x32xf32>, vector<16x32xf32> -> vector<16x32xf32>
    %57 = vector.shape_cast %53 : vector<16x32xf32> to vector<2x8x32xf32>
    %cst_28 = arith.constant 0.000000e+00 : f32
    %58 = vector.broadcast %cst_28 : f32 to vector<2x8x32xf32>
    %c0_i32 = arith.constant 0 : i32
    %59 = vector.broadcast %c0_i32 : i32 to vector<1x32xi32>
    %60 = arith.cmpi sge, %41, %59 : vector<1x32xi32>
    %c8_i32 = arith.constant 8 : i32
    %61 = vector.broadcast %c8_i32 : i32 to vector<1x32xi32>
    %62 = arith.cmpi slt, %41, %61 : vector<1x32xi32>
    %63 = arith.andi %60, %62 : vector<1x32xi1>
    %64 = arith.extui %63 : vector<1x32xi1> to vector<1x32xi32>
    %65 = arith.sitofp %64 : vector<1x32xi32> to vector<1x32xf32>
    %66 = vector.broadcast %65 : vector<1x32xf32> to vector<16x32xf32>
    %67 = arith.mulf %50, %66 : vector<16x32xf32>
    %68 = vector.shape_cast %67 : vector<16x32xf32> to vector<2x8x32xf32>
    %69 = vector.broadcast %65 : vector<1x32xf32> to vector<16x32xf32>
    %70 = arith.mulf %56, %69 : vector<16x32xf32>
    %71 = vector.shape_cast %70 : vector<16x32xf32> to vector<2x8x32xf32>
    "tpu.trace_start"() <{level = 10 : i32, message = "bqd,bkd->bqk"}> : () -> ()
    %cst_29 = arith.constant dense<0.000000e+00> : vector<2x8x8xf32>
    %72 = tpu.matmul %68, %57, %cst_29 {dimension_numbers = #tpu.dot_dimension_numbers<[2], [2], [1], [1], [0, 0, 0, 1, 1, 1], [0], [0]>} : vector<2x8x32xf32>, vector<2x8x32xf32>, vector<2x8x8xf32> -> vector<2x8x8xf32>
    "tpu.trace_stop"() : () -> ()
    %cst_30 = arith.constant 8.000000e+00 : f32
    %73 = vector.broadcast %cst_30 : f32 to vector<2x8x8xf32>
    %74 = arith.divf %72, %73 : vector<2x8x8xf32>
    %cst_31 = arith.constant 0.000000e+00 : f32
    %75 = vector.broadcast %cst_31 : f32 to vector<2x8x8xf32>
    %76 = arith.cmpf oeq, %40, %75 : vector<2x8x8xf32>
    %cst_32 = arith.constant -1.000000e+09 : f32
    %77 = vector.broadcast %cst_32 : f32 to vector<2x8x8xf32>
    %78 = arith.select %76, %77, %74 : vector<2x8x8xi1>, vector<2x8x8xf32>
    %cst_33 = arith.constant dense<0xFF800000> : vector<2x8xf32>
    %79 = vector.multi_reduction <maximumf>, %78, %cst_33 [2] : vector<2x8x8xf32> to vector<2x8xf32>
    %80 = vector.shape_cast %79 : vector<2x8xf32> to vector<2x8x1xf32>
    %81 = vector.broadcast %80 : vector<2x8x1xf32> to vector<2x8x8xf32>
    %82 = arith.subf %78, %81 : vector<2x8x8xf32>
    %83 = math.exp %82 : vector<2x8x8xf32>
    %cst_34 = arith.constant dense<0.000000e+00> : vector<2x8xf32>
    %84 = vector.multi_reduction <add>, %83, %cst_34 [2] : vector<2x8x8xf32> to vector<2x8xf32>
    %85 = vector.shape_cast %84 : vector<2x8xf32> to vector<2x8x1xf32>
    %86 = vector.broadcast %85 : vector<2x8x1xf32> to vector<2x8x8xf32>
    %87 = arith.divf %83, %86 : vector<2x8x8xf32>
    "tpu.trace_start"() <{level = 10 : i32, message = "bqk,bkd->bqd"}> : () -> ()
    %cst_35 = arith.constant dense<0.000000e+00> : vector<2x8x32xf32>
    %88 = tpu.matmul %87, %71, %cst_35 {dimension_numbers = #tpu.dot_dimension_numbers<[2], [1], [1], [2], [0, 0, 0, 1, 1, 2], [0], [0]>} : vector<2x8x8xf32>, vector<2x8x32xf32>, vector<2x8x32xf32> -> vector<2x8x32xf32>
    "tpu.trace_stop"() : () -> ()
    %89 = arith.addf %58, %88 : vector<2x8x32xf32>
    %c8_i32_36 = arith.constant 8 : i32
    %90 = vector.broadcast %c8_i32_36 : i32 to vector<1x32xi32>
    %91 = arith.cmpi sge, %41, %90 : vector<1x32xi32>
    %c16_i32 = arith.constant 16 : i32
    %92 = vector.broadcast %c16_i32 : i32 to vector<1x32xi32>
    %93 = arith.cmpi slt, %41, %92 : vector<1x32xi32>
    %94 = arith.andi %91, %93 : vector<1x32xi1>
    %95 = arith.extui %94 : vector<1x32xi1> to vector<1x32xi32>
    %96 = arith.sitofp %95 : vector<1x32xi32> to vector<1x32xf32>
    %97 = vector.broadcast %96 : vector<1x32xf32> to vector<16x32xf32>
    %98 = arith.mulf %50, %97 : vector<16x32xf32>
    %99 = vector.shape_cast %98 : vector<16x32xf32> to vector<2x8x32xf32>
    %100 = vector.broadcast %96 : vector<1x32xf32> to vector<16x32xf32>
    %101 = arith.mulf %56, %100 : vector<16x32xf32>
    %102 = vector.shape_cast %101 : vector<16x32xf32> to vector<2x8x32xf32>
    "tpu.trace_start"() <{level = 10 : i32, message = "bqd,bkd->bqk"}> : () -> ()
    %cst_37 = arith.constant dense<0.000000e+00> : vector<2x8x8xf32>
    %103 = tpu.matmul %99, %57, %cst_37 {dimension_numbers = #tpu.dot_dimension_numbers<[2], [2], [1], [1], [0, 0, 0, 1, 1, 1], [0], [0]>} : vector<2x8x32xf32>, vector<2x8x32xf32>, vector<2x8x8xf32> -> vector<2x8x8xf32>
    "tpu.trace_stop"() : () -> ()
    %cst_38 = arith.constant 8.000000e+00 : f32
    %104 = vector.broadcast %cst_38 : f32 to vector<2x8x8xf32>
    %105 = arith.divf %103, %104 : vector<2x8x8xf32>
    %cst_39 = arith.constant 0.000000e+00 : f32
    %106 = vector.broadcast %cst_39 : f32 to vector<2x8x8xf32>
    %107 = arith.cmpf oeq, %40, %106 : vector<2x8x8xf32>
    %cst_40 = arith.constant -1.000000e+09 : f32
    %108 = vector.broadcast %cst_40 : f32 to vector<2x8x8xf32>
    %109 = arith.select %107, %108, %105 : vector<2x8x8xi1>, vector<2x8x8xf32>
    %cst_41 = arith.constant dense<0xFF800000> : vector<2x8xf32>
    %110 = vector.multi_reduction <maximumf>, %109, %cst_41 [2] : vector<2x8x8xf32> to vector<2x8xf32>
    %111 = vector.shape_cast %110 : vector<2x8xf32> to vector<2x8x1xf32>
    %112 = vector.broadcast %111 : vector<2x8x1xf32> to vector<2x8x8xf32>
    %113 = arith.subf %109, %112 : vector<2x8x8xf32>
    %114 = math.exp %113 : vector<2x8x8xf32>
    %cst_42 = arith.constant dense<0.000000e+00> : vector<2x8xf32>
    %115 = vector.multi_reduction <add>, %114, %cst_42 [2] : vector<2x8x8xf32> to vector<2x8xf32>
    %116 = vector.shape_cast %115 : vector<2x8xf32> to vector<2x8x1xf32>
    %117 = vector.broadcast %116 : vector<2x8x1xf32> to vector<2x8x8xf32>
    %118 = arith.divf %114, %117 : vector<2x8x8xf32>
    "tpu.trace_start"() <{level = 10 : i32, message = "bqk,bkd->bqd"}> : () -> ()
    %cst_43 = arith.constant dense<0.000000e+00> : vector<2x8x32xf32>
    %119 = tpu.matmul %118, %102, %cst_43 {dimension_numbers = #tpu.dot_dimension_numbers<[2], [1], [1], [2], [0, 0, 0, 1, 1, 2], [0], [0]>} : vector<2x8x8xf32>, vector<2x8x32xf32>, vector<2x8x32xf32> -> vector<2x8x32xf32>
    "tpu.trace_stop"() : () -> ()
    %120 = arith.addf %89, %119 : vector<2x8x32xf32>
    %c16_i32_44 = arith.constant 16 : i32
    %121 = vector.broadcast %c16_i32_44 : i32 to vector<1x32xi32>
    %122 = arith.cmpi sge, %41, %121 : vector<1x32xi32>
    %c24_i32 = arith.constant 24 : i32
    %123 = vector.broadcast %c24_i32 : i32 to vector<1x32xi32>
    %124 = arith.cmpi slt, %41, %123 : vector<1x32xi32>
    %125 = arith.andi %122, %124 : vector<1x32xi1>
    %126 = arith.extui %125 : vector<1x32xi1> to vector<1x32xi32>
    %127 = arith.sitofp %126 : vector<1x32xi32> to vector<1x32xf32>
    %128 = vector.broadcast %127 : vector<1x32xf32> to vector<16x32xf32>
    %129 = arith.mulf %50, %128 : vector<16x32xf32>
    %130 = vector.shape_cast %129 : vector<16x32xf32> to vector<2x8x32xf32>
    %131 = vector.broadcast %127 : vector<1x32xf32> to vector<16x32xf32>
    %132 = arith.mulf %56, %131 : vector<16x32xf32>
    %133 = vector.shape_cast %132 : vector<16x32xf32> to vector<2x8x32xf32>
    "tpu.trace_start"() <{level = 10 : i32, message = "bqd,bkd->bqk"}> : () -> ()
    %cst_45 = arith.constant dense<0.000000e+00> : vector<2x8x8xf32>
    %134 = tpu.matmul %130, %57, %cst_45 {dimension_numbers = #tpu.dot_dimension_numbers<[2], [2], [1], [1], [0, 0, 0, 1, 1, 1], [0], [0]>} : vector<2x8x32xf32>, vector<2x8x32xf32>, vector<2x8x8xf32> -> vector<2x8x8xf32>
    "tpu.trace_stop"() : () -> ()
    %cst_46 = arith.constant 8.000000e+00 : f32
    %135 = vector.broadcast %cst_46 : f32 to vector<2x8x8xf32>
    %136 = arith.divf %134, %135 : vector<2x8x8xf32>
    %cst_47 = arith.constant 0.000000e+00 : f32
    %137 = vector.broadcast %cst_47 : f32 to vector<2x8x8xf32>
    %138 = arith.cmpf oeq, %40, %137 : vector<2x8x8xf32>
    %cst_48 = arith.constant -1.000000e+09 : f32
    %139 = vector.broadcast %cst_48 : f32 to vector<2x8x8xf32>
    %140 = arith.select %138, %139, %136 : vector<2x8x8xi1>, vector<2x8x8xf32>
    %cst_49 = arith.constant dense<0xFF800000> : vector<2x8xf32>
    %141 = vector.multi_reduction <maximumf>, %140, %cst_49 [2] : vector<2x8x8xf32> to vector<2x8xf32>
    %142 = vector.shape_cast %141 : vector<2x8xf32> to vector<2x8x1xf32>
    %143 = vector.broadcast %142 : vector<2x8x1xf32> to vector<2x8x8xf32>
    %144 = arith.subf %140, %143 : vector<2x8x8xf32>
    %145 = math.exp %144 : vector<2x8x8xf32>
    %cst_50 = arith.constant dense<0.000000e+00> : vector<2x8xf32>
    %146 = vector.multi_reduction <add>, %145, %cst_50 [2] : vector<2x8x8xf32> to vector<2x8xf32>
    %147 = vector.shape_cast %146 : vector<2x8xf32> to vector<2x8x1xf32>
    %148 = vector.broadcast %147 : vector<2x8x1xf32> to vector<2x8x8xf32>
    %149 = arith.divf %145, %148 : vector<2x8x8xf32>
    "tpu.trace_start"() <{level = 10 : i32, message = "bqk,bkd->bqd"}> : () -> ()
    %cst_51 = arith.constant dense<0.000000e+00> : vector<2x8x32xf32>
    %150 = tpu.matmul %149, %133, %cst_51 {dimension_numbers = #tpu.dot_dimension_numbers<[2], [1], [1], [2], [0, 0, 0, 1, 1, 2], [0], [0]>} : vector<2x8x8xf32>, vector<2x8x32xf32>, vector<2x8x32xf32> -> vector<2x8x32xf32>
    "tpu.trace_stop"() : () -> ()
    %151 = arith.addf %120, %150 : vector<2x8x32xf32>
    %c24_i32_52 = arith.constant 24 : i32
    %152 = vector.broadcast %c24_i32_52 : i32 to vector<1x32xi32>
    %153 = arith.cmpi sge, %41, %152 : vector<1x32xi32>
    %c32_i32 = arith.constant 32 : i32
    %154 = vector.broadcast %c32_i32 : i32 to vector<1x32xi32>
    %155 = arith.cmpi slt, %41, %154 : vector<1x32xi32>
    %156 = arith.andi %153, %155 : vector<1x32xi1>
    %157 = arith.extui %156 : vector<1x32xi1> to vector<1x32xi32>
    %158 = arith.sitofp %157 : vector<1x32xi32> to vector<1x32xf32>
    %159 = vector.broadcast %158 : vector<1x32xf32> to vector<16x32xf32>
    %160 = arith.mulf %50, %159 : vector<16x32xf32>
    %161 = vector.shape_cast %160 : vector<16x32xf32> to vector<2x8x32xf32>
    %162 = vector.broadcast %158 : vector<1x32xf32> to vector<16x32xf32>
    %163 = arith.mulf %56, %162 : vector<16x32xf32>
    %164 = vector.shape_cast %163 : vector<16x32xf32> to vector<2x8x32xf32>
    "tpu.trace_start"() <{level = 10 : i32, message = "bqd,bkd->bqk"}> : () -> ()
    %cst_53 = arith.constant dense<0.000000e+00> : vector<2x8x8xf32>
    %165 = tpu.matmul %161, %57, %cst_53 {dimension_numbers = #tpu.dot_dimension_numbers<[2], [2], [1], [1], [0, 0, 0, 1, 1, 1], [0], [0]>} : vector<2x8x32xf32>, vector<2x8x32xf32>, vector<2x8x8xf32> -> vector<2x8x8xf32>
    "tpu.trace_stop"() : () -> ()
    %cst_54 = arith.constant 8.000000e+00 : f32
    %166 = vector.broadcast %cst_54 : f32 to vector<2x8x8xf32>
    %167 = arith.divf %165, %166 : vector<2x8x8xf32>
    %cst_55 = arith.constant 0.000000e+00 : f32
    %168 = vector.broadcast %cst_55 : f32 to vector<2x8x8xf32>
    %169 = arith.cmpf oeq, %40, %168 : vector<2x8x8xf32>
    %cst_56 = arith.constant -1.000000e+09 : f32
    %170 = vector.broadcast %cst_56 : f32 to vector<2x8x8xf32>
    %171 = arith.select %169, %170, %167 : vector<2x8x8xi1>, vector<2x8x8xf32>
    %cst_57 = arith.constant dense<0xFF800000> : vector<2x8xf32>
    %172 = vector.multi_reduction <maximumf>, %171, %cst_57 [2] : vector<2x8x8xf32> to vector<2x8xf32>
    %173 = vector.shape_cast %172 : vector<2x8xf32> to vector<2x8x1xf32>
    %174 = vector.broadcast %173 : vector<2x8x1xf32> to vector<2x8x8xf32>
    %175 = arith.subf %171, %174 : vector<2x8x8xf32>
    %176 = math.exp %175 : vector<2x8x8xf32>
    %cst_58 = arith.constant dense<0.000000e+00> : vector<2x8xf32>
    %177 = vector.multi_reduction <add>, %176, %cst_58 [2] : vector<2x8x8xf32> to vector<2x8xf32>
    %178 = vector.shape_cast %177 : vector<2x8xf32> to vector<2x8x1xf32>
    %179 = vector.broadcast %178 : vector<2x8x1xf32> to vector<2x8x8xf32>
    %180 = arith.divf %176, %179 : vector<2x8x8xf32>
    "tpu.trace_start"() <{level = 10 : i32, message = "bqk,bkd->bqd"}> : () -> ()
    %cst_59 = arith.constant dense<0.000000e+00> : vector<2x8x32xf32>
    %181 = tpu.matmul %180, %164, %cst_59 {dimension_numbers = #tpu.dot_dimension_numbers<[2], [1], [1], [2], [0, 0, 0, 1, 1, 2], [0], [0]>} : vector<2x8x8xf32>, vector<2x8x32xf32>, vector<2x8x32xf32> -> vector<2x8x32xf32>
    "tpu.trace_stop"() : () -> ()
    %182 = arith.addf %151, %181 : vector<2x8x32xf32>
    %183 = vector.shape_cast %182 : vector<2x8x32xf32> to vector<16x32xf32>
    %c3 = arith.constant 3 : index
    %c0_60 = arith.constant 0 : index
    %c0_61 = arith.constant 0 : index
    %184 = vector.load %arg7[%c3, %c0_60, %c0_61] : memref<8x32x32xf32, #tpu.memory_space<vmem>>, vector<1x32x32xf32>
    %185 = vector.shape_cast %184 : vector<1x32x32xf32> to vector<32x32xf32>
    %cst_62 = arith.constant dense<0.000000e+00> : vector<16x32xf32>
    %186 = tpu.matmul %183, %185, %cst_62 {dimension_numbers = #tpu.dot_dimension_numbers<[1], [0], [0], [1], [0, 0, 1, 1], [], []>} : vector<16x32xf32>, vector<32x32xf32>, vector<16x32xf32> -> vector<16x32xf32>
    %187 = arith.addf %186, %37 : vector<16x32xf32>
    %cst_63 = arith.constant dense<0.000000e+00> : vector<16xf32>
    %188 = vector.multi_reduction <add>, %187, %cst_63 [1] : vector<16x32xf32> to vector<16xf32>
    %189 = vector.shape_cast %188 : vector<16xf32> to vector<16x1xf32>
    %cst_64 = arith.constant 3.200000e+01 : f32
    %190 = vector.broadcast %cst_64 : f32 to vector<16x1xf32>
    %191 = arith.divf %189, %190 : vector<16x1xf32>
    %192 = vector.broadcast %191 : vector<16x1xf32> to vector<16x32xf32>
    %193 = arith.subf %187, %192 : vector<16x32xf32>
    %194 = arith.mulf %193, %193 : vector<16x32xf32>
    %cst_65 = arith.constant dense<0.000000e+00> : vector<16xf32>
    %195 = vector.multi_reduction <add>, %194, %cst_65 [1] : vector<16x32xf32> to vector<16xf32>
    %196 = vector.shape_cast %195 : vector<16xf32> to vector<16x1xf32>
    %cst_66 = arith.constant 3.100000e+01 : f32
    %197 = vector.broadcast %cst_66 : f32 to vector<16x1xf32>
    %198 = arith.divf %196, %197 : vector<16x1xf32>
    %199 = math.sqrt %198 : vector<16x1xf32>
    %cst_67 = arith.constant 9.99999997E-7 : f32
    %200 = vector.broadcast %cst_67 : f32 to vector<16x1xf32>
    %201 = arith.addf %199, %200 : vector<16x1xf32>
    %202 = vector.broadcast %191 : vector<16x1xf32> to vector<16x32xf32>
    %203 = arith.subf %187, %202 : vector<16x32xf32>
    %204 = vector.broadcast %201 : vector<16x1xf32> to vector<16x32xf32>
    %205 = arith.divf %203, %204 : vector<16x32xf32>
    %206 = vector.broadcast %42 : vector<1x32xf32> to vector<16x32xf32>
    %207 = arith.mulf %206, %205 : vector<16x32xf32>
    %208 = vector.broadcast %43 : vector<1x32xf32> to vector<16x32xf32>
    %209 = arith.addf %207, %208 : vector<16x32xf32>
    %c0_68 = arith.constant 0 : index
    %c0_69 = arith.constant 0 : index
    %c0_70 = arith.constant 0 : index
    %210 = vector.load %arg8[%c0_68, %c0_69, %c0_70] : memref<2x32x64xf32, #tpu.memory_space<vmem>>, vector<1x32x64xf32>
    %211 = vector.shape_cast %210 : vector<1x32x64xf32> to vector<32x64xf32>
    %cst_71 = arith.constant dense<0.000000e+00> : vector<16x64xf32>
    %212 = tpu.matmul %209, %211, %cst_71 {dimension_numbers = #tpu.dot_dimension_numbers<[1], [0], [0], [1], [0, 0, 1, 1], [], []>} : vector<16x32xf32>, vector<32x64xf32>, vector<16x64xf32> -> vector<16x64xf32>
    %213 = vector.broadcast %47 : vector<1x64xf32> to vector<16x64xf32>
    %214 = arith.addf %212, %213 : vector<16x64xf32>
    %cst_72 = arith.constant 0.000000e+00 : f32
    %215 = vector.broadcast %cst_72 : f32 to vector<16x64xf32>
    %216 = arith.maximumf %214, %215 : vector<16x64xf32>
    %c0_73 = arith.constant 0 : index
    %c0_74 = arith.constant 0 : index
    %c0_75 = arith.constant 0 : index
    %217 = vector.load %arg9[%c0_73, %c0_74, %c0_75] : memref<2x64x32xf32, #tpu.memory_space<vmem>>, vector<1x64x32xf32>
    %218 = vector.shape_cast %217 : vector<1x64x32xf32> to vector<64x32xf32>
    %cst_76 = arith.constant dense<0.000000e+00> : vector<16x32xf32>
    %219 = tpu.matmul %216, %218, %cst_76 {dimension_numbers = #tpu.dot_dimension_numbers<[1], [0], [0], [1], [0, 0, 1, 1], [], []>} : vector<16x64xf32>, vector<64x32xf32>, vector<16x32xf32> -> vector<16x32xf32>
    %220 = vector.broadcast %46 : vector<1x32xf32> to vector<16x32xf32>
    %221 = arith.addf %219, %220 : vector<16x32xf32>
    %222 = arith.addf %221, %209 : vector<16x32xf32>
    %cst_77 = arith.constant dense<0.000000e+00> : vector<16xf32>
    %223 = vector.multi_reduction <add>, %222, %cst_77 [1] : vector<16x32xf32> to vector<16xf32>
    %224 = vector.shape_cast %223 : vector<16xf32> to vector<16x1xf32>
    %cst_78 = arith.constant 3.200000e+01 : f32
    %225 = vector.broadcast %cst_78 : f32 to vector<16x1xf32>
    %226 = arith.divf %224, %225 : vector<16x1xf32>
    %227 = vector.broadcast %226 : vector<16x1xf32> to vector<16x32xf32>
    %228 = arith.subf %222, %227 : vector<16x32xf32>
    %229 = arith.mulf %228, %228 : vector<16x32xf32>
    %cst_79 = arith.constant dense<0.000000e+00> : vector<16xf32>
    %230 = vector.multi_reduction <add>, %229, %cst_79 [1] : vector<16x32xf32> to vector<16xf32>
    %231 = vector.shape_cast %230 : vector<16xf32> to vector<16x1xf32>
    %cst_80 = arith.constant 3.100000e+01 : f32
    %232 = vector.broadcast %cst_80 : f32 to vector<16x1xf32>
    %233 = arith.divf %231, %232 : vector<16x1xf32>
    %234 = math.sqrt %233 : vector<16x1xf32>
    %cst_81 = arith.constant 9.99999997E-7 : f32
    %235 = vector.broadcast %cst_81 : f32 to vector<16x1xf32>
    %236 = arith.addf %234, %235 : vector<16x1xf32>
    %237 = vector.broadcast %226 : vector<16x1xf32> to vector<16x32xf32>
    %238 = arith.subf %222, %237 : vector<16x32xf32>
    %239 = vector.broadcast %236 : vector<16x1xf32> to vector<16x32xf32>
    %240 = arith.divf %238, %239 : vector<16x32xf32>
    %241 = vector.broadcast %44 : vector<1x32xf32> to vector<16x32xf32>
    %242 = arith.mulf %241, %240 : vector<16x32xf32>
    %243 = vector.broadcast %45 : vector<1x32xf32> to vector<16x32xf32>
    %244 = arith.addf %242, %243 : vector<16x32xf32>
    %245 = vector.extract_strided_slice %12 {offsets = [7, 0], sizes = [1, 32], strides = [1, 1]} : vector<12x32xf32> to vector<1x32xf32>
    %246 = vector.extract_strided_slice %12 {offsets = [8, 0], sizes = [1, 32], strides = [1, 1]} : vector<12x32xf32> to vector<1x32xf32>
    %247 = vector.extract_strided_slice %12 {offsets = [9, 0], sizes = [1, 32], strides = [1, 1]} : vector<12x32xf32> to vector<1x32xf32>
    %248 = vector.extract_strided_slice %12 {offsets = [10, 0], sizes = [1, 32], strides = [1, 1]} : vector<12x32xf32> to vector<1x32xf32>
    %249 = vector.extract_strided_slice %12 {offsets = [11, 0], sizes = [1, 32], strides = [1, 1]} : vector<12x32xf32> to vector<1x32xf32>
    %250 = vector.extract_strided_slice %13 {offsets = [1, 0], sizes = [1, 64], strides = [1, 1]} : vector<2x64xf32> to vector<1x64xf32>
    %c4 = arith.constant 4 : index
    %c0_82 = arith.constant 0 : index
    %c0_83 = arith.constant 0 : index
    %251 = vector.load %arg7[%c4, %c0_82, %c0_83] : memref<8x32x32xf32, #tpu.memory_space<vmem>>, vector<1x32x32xf32>
    %252 = vector.shape_cast %251 : vector<1x32x32xf32> to vector<32x32xf32>
    %cst_84 = arith.constant dense<0.000000e+00> : vector<16x32xf32>
    %253 = tpu.matmul %244, %252, %cst_84 {dimension_numbers = #tpu.dot_dimension_numbers<[1], [0], [0], [1], [0, 0, 1, 1], [], []>} : vector<16x32xf32>, vector<32x32xf32>, vector<16x32xf32> -> vector<16x32xf32>
    %c5 = arith.constant 5 : index
    %c0_85 = arith.constant 0 : index
    %c0_86 = arith.constant 0 : index
    %254 = vector.load %arg7[%c5, %c0_85, %c0_86] : memref<8x32x32xf32, #tpu.memory_space<vmem>>, vector<1x32x32xf32>
    %255 = vector.shape_cast %254 : vector<1x32x32xf32> to vector<32x32xf32>
    %cst_87 = arith.constant dense<0.000000e+00> : vector<16x32xf32>
    %256 = tpu.matmul %244, %255, %cst_87 {dimension_numbers = #tpu.dot_dimension_numbers<[1], [0], [0], [1], [0, 0, 1, 1], [], []>} : vector<16x32xf32>, vector<32x32xf32>, vector<16x32xf32> -> vector<16x32xf32>
    %c6 = arith.constant 6 : index
    %c0_88 = arith.constant 0 : index
    %c0_89 = arith.constant 0 : index
    %257 = vector.load %arg7[%c6, %c0_88, %c0_89] : memref<8x32x32xf32, #tpu.memory_space<vmem>>, vector<1x32x32xf32>
    %258 = vector.shape_cast %257 : vector<1x32x32xf32> to vector<32x32xf32>
    %cst_90 = arith.constant dense<0.000000e+00> : vector<16x32xf32>
    %259 = tpu.matmul %244, %258, %cst_90 {dimension_numbers = #tpu.dot_dimension_numbers<[1], [0], [0], [1], [0, 0, 1, 1], [], []>} : vector<16x32xf32>, vector<32x32xf32>, vector<16x32xf32> -> vector<16x32xf32>
    %260 = vector.shape_cast %256 : vector<16x32xf32> to vector<2x8x32xf32>
    %cst_91 = arith.constant 0.000000e+00 : f32
    %261 = vector.broadcast %cst_91 : f32 to vector<2x8x32xf32>
    %c0_i32_92 = arith.constant 0 : i32
    %262 = vector.broadcast %c0_i32_92 : i32 to vector<1x32xi32>
    %263 = arith.cmpi sge, %41, %262 : vector<1x32xi32>
    %c8_i32_93 = arith.constant 8 : i32
    %264 = vector.broadcast %c8_i32_93 : i32 to vector<1x32xi32>
    %265 = arith.cmpi slt, %41, %264 : vector<1x32xi32>
    %266 = arith.andi %263, %265 : vector<1x32xi1>
    %267 = arith.extui %266 : vector<1x32xi1> to vector<1x32xi32>
    %268 = arith.sitofp %267 : vector<1x32xi32> to vector<1x32xf32>
    %269 = vector.broadcast %268 : vector<1x32xf32> to vector<16x32xf32>
    %270 = arith.mulf %253, %269 : vector<16x32xf32>
    %271 = vector.shape_cast %270 : vector<16x32xf32> to vector<2x8x32xf32>
    %272 = vector.broadcast %268 : vector<1x32xf32> to vector<16x32xf32>
    %273 = arith.mulf %259, %272 : vector<16x32xf32>
    %274 = vector.shape_cast %273 : vector<16x32xf32> to vector<2x8x32xf32>
    "tpu.trace_start"() <{level = 10 : i32, message = "bqd,bkd->bqk"}> : () -> ()
    %cst_94 = arith.constant dense<0.000000e+00> : vector<2x8x8xf32>
    %275 = tpu.matmul %271, %260, %cst_94 {dimension_numbers = #tpu.dot_dimension_numbers<[2], [2], [1], [1], [0, 0, 0, 1, 1, 1], [0], [0]>} : vector<2x8x32xf32>, vector<2x8x32xf32>, vector<2x8x8xf32> -> vector<2x8x8xf32>
    "tpu.trace_stop"() : () -> ()
    %cst_95 = arith.constant 8.000000e+00 : f32
    %276 = vector.broadcast %cst_95 : f32 to vector<2x8x8xf32>
    %277 = arith.divf %275, %276 : vector<2x8x8xf32>
    %cst_96 = arith.constant 0.000000e+00 : f32
    %278 = vector.broadcast %cst_96 : f32 to vector<2x8x8xf32>
    %279 = arith.cmpf oeq, %40, %278 : vector<2x8x8xf32>
    %cst_97 = arith.constant -1.000000e+09 : f32
    %280 = vector.broadcast %cst_97 : f32 to vector<2x8x8xf32>
    %281 = arith.select %279, %280, %277 : vector<2x8x8xi1>, vector<2x8x8xf32>
    %cst_98 = arith.constant dense<0xFF800000> : vector<2x8xf32>
    %282 = vector.multi_reduction <maximumf>, %281, %cst_98 [2] : vector<2x8x8xf32> to vector<2x8xf32>
    %283 = vector.shape_cast %282 : vector<2x8xf32> to vector<2x8x1xf32>
    %284 = vector.broadcast %283 : vector<2x8x1xf32> to vector<2x8x8xf32>
    %285 = arith.subf %281, %284 : vector<2x8x8xf32>
    %286 = math.exp %285 : vector<2x8x8xf32>
    %cst_99 = arith.constant dense<0.000000e+00> : vector<2x8xf32>
    %287 = vector.multi_reduction <add>, %286, %cst_99 [2] : vector<2x8x8xf32> to vector<2x8xf32>
    %288 = vector.shape_cast %287 : vector<2x8xf32> to vector<2x8x1xf32>
    %289 = vector.broadcast %288 : vector<2x8x1xf32> to vector<2x8x8xf32>
    %290 = arith.divf %286, %289 : vector<2x8x8xf32>
    "tpu.trace_start"() <{level = 10 : i32, message = "bqk,bkd->bqd"}> : () -> ()
    %cst_100 = arith.constant dense<0.000000e+00> : vector<2x8x32xf32>
    %291 = tpu.matmul %290, %274, %cst_100 {dimension_numbers = #tpu.dot_dimension_numbers<[2], [1], [1], [2], [0, 0, 0, 1, 1, 2], [0], [0]>} : vector<2x8x8xf32>, vector<2x8x32xf32>, vector<2x8x32xf32> -> vector<2x8x32xf32>
    "tpu.trace_stop"() : () -> ()
    %292 = arith.addf %261, %291 : vector<2x8x32xf32>
    %c8_i32_101 = arith.constant 8 : i32
    %293 = vector.broadcast %c8_i32_101 : i32 to vector<1x32xi32>
    %294 = arith.cmpi sge, %41, %293 : vector<1x32xi32>
    %c16_i32_102 = arith.constant 16 : i32
    %295 = vector.broadcast %c16_i32_102 : i32 to vector<1x32xi32>
    %296 = arith.cmpi slt, %41, %295 : vector<1x32xi32>
    %297 = arith.andi %294, %296 : vector<1x32xi1>
    %298 = arith.extui %297 : vector<1x32xi1> to vector<1x32xi32>
    %299 = arith.sitofp %298 : vector<1x32xi32> to vector<1x32xf32>
    %300 = vector.broadcast %299 : vector<1x32xf32> to vector<16x32xf32>
    %301 = arith.mulf %253, %300 : vector<16x32xf32>
    %302 = vector.shape_cast %301 : vector<16x32xf32> to vector<2x8x32xf32>
    %303 = vector.broadcast %299 : vector<1x32xf32> to vector<16x32xf32>
    %304 = arith.mulf %259, %303 : vector<16x32xf32>
    %305 = vector.shape_cast %304 : vector<16x32xf32> to vector<2x8x32xf32>
    "tpu.trace_start"() <{level = 10 : i32, message = "bqd,bkd->bqk"}> : () -> ()
    %cst_103 = arith.constant dense<0.000000e+00> : vector<2x8x8xf32>
    %306 = tpu.matmul %302, %260, %cst_103 {dimension_numbers = #tpu.dot_dimension_numbers<[2], [2], [1], [1], [0, 0, 0, 1, 1, 1], [0], [0]>} : vector<2x8x32xf32>, vector<2x8x32xf32>, vector<2x8x8xf32> -> vector<2x8x8xf32>
    "tpu.trace_stop"() : () -> ()
    %cst_104 = arith.constant 8.000000e+00 : f32
    %307 = vector.broadcast %cst_104 : f32 to vector<2x8x8xf32>
    %308 = arith.divf %306, %307 : vector<2x8x8xf32>
    %cst_105 = arith.constant 0.000000e+00 : f32
    %309 = vector.broadcast %cst_105 : f32 to vector<2x8x8xf32>
    %310 = arith.cmpf oeq, %40, %309 : vector<2x8x8xf32>
    %cst_106 = arith.constant -1.000000e+09 : f32
    %311 = vector.broadcast %cst_106 : f32 to vector<2x8x8xf32>
    %312 = arith.select %310, %311, %308 : vector<2x8x8xi1>, vector<2x8x8xf32>
    %cst_107 = arith.constant dense<0xFF800000> : vector<2x8xf32>
    %313 = vector.multi_reduction <maximumf>, %312, %cst_107 [2] : vector<2x8x8xf32> to vector<2x8xf32>
    %314 = vector.shape_cast %313 : vector<2x8xf32> to vector<2x8x1xf32>
    %315 = vector.broadcast %314 : vector<2x8x1xf32> to vector<2x8x8xf32>
    %316 = arith.subf %312, %315 : vector<2x8x8xf32>
    %317 = math.exp %316 : vector<2x8x8xf32>
    %cst_108 = arith.constant dense<0.000000e+00> : vector<2x8xf32>
    %318 = vector.multi_reduction <add>, %317, %cst_108 [2] : vector<2x8x8xf32> to vector<2x8xf32>
    %319 = vector.shape_cast %318 : vector<2x8xf32> to vector<2x8x1xf32>
    %320 = vector.broadcast %319 : vector<2x8x1xf32> to vector<2x8x8xf32>
    %321 = arith.divf %317, %320 : vector<2x8x8xf32>
    "tpu.trace_start"() <{level = 10 : i32, message = "bqk,bkd->bqd"}> : () -> ()
    %cst_109 = arith.constant dense<0.000000e+00> : vector<2x8x32xf32>
    %322 = tpu.matmul %321, %305, %cst_109 {dimension_numbers = #tpu.dot_dimension_numbers<[2], [1], [1], [2], [0, 0, 0, 1, 1, 2], [0], [0]>} : vector<2x8x8xf32>, vector<2x8x32xf32>, vector<2x8x32xf32> -> vector<2x8x32xf32>
    "tpu.trace_stop"() : () -> ()
    %323 = arith.addf %292, %322 : vector<2x8x32xf32>
    %c16_i32_110 = arith.constant 16 : i32
    %324 = vector.broadcast %c16_i32_110 : i32 to vector<1x32xi32>
    %325 = arith.cmpi sge, %41, %324 : vector<1x32xi32>
    %c24_i32_111 = arith.constant 24 : i32
    %326 = vector.broadcast %c24_i32_111 : i32 to vector<1x32xi32>
    %327 = arith.cmpi slt, %41, %326 : vector<1x32xi32>
    %328 = arith.andi %325, %327 : vector<1x32xi1>
    %329 = arith.extui %328 : vector<1x32xi1> to vector<1x32xi32>
    %330 = arith.sitofp %329 : vector<1x32xi32> to vector<1x32xf32>
    %331 = vector.broadcast %330 : vector<1x32xf32> to vector<16x32xf32>
    %332 = arith.mulf %253, %331 : vector<16x32xf32>
    %333 = vector.shape_cast %332 : vector<16x32xf32> to vector<2x8x32xf32>
    %334 = vector.broadcast %330 : vector<1x32xf32> to vector<16x32xf32>
    %335 = arith.mulf %259, %334 : vector<16x32xf32>
    %336 = vector.shape_cast %335 : vector<16x32xf32> to vector<2x8x32xf32>
    "tpu.trace_start"() <{level = 10 : i32, message = "bqd,bkd->bqk"}> : () -> ()
    %cst_112 = arith.constant dense<0.000000e+00> : vector<2x8x8xf32>
    %337 = tpu.matmul %333, %260, %cst_112 {dimension_numbers = #tpu.dot_dimension_numbers<[2], [2], [1], [1], [0, 0, 0, 1, 1, 1], [0], [0]>} : vector<2x8x32xf32>, vector<2x8x32xf32>, vector<2x8x8xf32> -> vector<2x8x8xf32>
    "tpu.trace_stop"() : () -> ()
    %cst_113 = arith.constant 8.000000e+00 : f32
    %338 = vector.broadcast %cst_113 : f32 to vector<2x8x8xf32>
    %339 = arith.divf %337, %338 : vector<2x8x8xf32>
    %cst_114 = arith.constant 0.000000e+00 : f32
    %340 = vector.broadcast %cst_114 : f32 to vector<2x8x8xf32>
    %341 = arith.cmpf oeq, %40, %340 : vector<2x8x8xf32>
    %cst_115 = arith.constant -1.000000e+09 : f32
    %342 = vector.broadcast %cst_115 : f32 to vector<2x8x8xf32>
    %343 = arith.select %341, %342, %339 : vector<2x8x8xi1>, vector<2x8x8xf32>
    %cst_116 = arith.constant dense<0xFF800000> : vector<2x8xf32>
    %344 = vector.multi_reduction <maximumf>, %343, %cst_116 [2] : vector<2x8x8xf32> to vector<2x8xf32>
    %345 = vector.shape_cast %344 : vector<2x8xf32> to vector<2x8x1xf32>
    %346 = vector.broadcast %345 : vector<2x8x1xf32> to vector<2x8x8xf32>
    %347 = arith.subf %343, %346 : vector<2x8x8xf32>
    %348 = math.exp %347 : vector<2x8x8xf32>
    %cst_117 = arith.constant dense<0.000000e+00> : vector<2x8xf32>
    %349 = vector.multi_reduction <add>, %348, %cst_117 [2] : vector<2x8x8xf32> to vector<2x8xf32>
    %350 = vector.shape_cast %349 : vector<2x8xf32> to vector<2x8x1xf32>
    %351 = vector.broadcast %350 : vector<2x8x1xf32> to vector<2x8x8xf32>
    %352 = arith.divf %348, %351 : vector<2x8x8xf32>
    "tpu.trace_start"() <{level = 10 : i32, message = "bqk,bkd->bqd"}> : () -> ()
    %cst_118 = arith.constant dense<0.000000e+00> : vector<2x8x32xf32>
    %353 = tpu.matmul %352, %336, %cst_118 {dimension_numbers = #tpu.dot_dimension_numbers<[2], [1], [1], [2], [0, 0, 0, 1, 1, 2], [0], [0]>} : vector<2x8x8xf32>, vector<2x8x32xf32>, vector<2x8x32xf32> -> vector<2x8x32xf32>
    "tpu.trace_stop"() : () -> ()
    %354 = arith.addf %323, %353 : vector<2x8x32xf32>
    %c24_i32_119 = arith.constant 24 : i32
    %355 = vector.broadcast %c24_i32_119 : i32 to vector<1x32xi32>
    %356 = arith.cmpi sge, %41, %355 : vector<1x32xi32>
    %c32_i32_120 = arith.constant 32 : i32
    %357 = vector.broadcast %c32_i32_120 : i32 to vector<1x32xi32>
    %358 = arith.cmpi slt, %41, %357 : vector<1x32xi32>
    %359 = arith.andi %356, %358 : vector<1x32xi1>
    %360 = arith.extui %359 : vector<1x32xi1> to vector<1x32xi32>
    %361 = arith.sitofp %360 : vector<1x32xi32> to vector<1x32xf32>
    %362 = vector.broadcast %361 : vector<1x32xf32> to vector<16x32xf32>
    %363 = arith.mulf %253, %362 : vector<16x32xf32>
    %364 = vector.shape_cast %363 : vector<16x32xf32> to vector<2x8x32xf32>
    %365 = vector.broadcast %361 : vector<1x32xf32> to vector<16x32xf32>
    %366 = arith.mulf %259, %365 : vector<16x32xf32>
    %367 = vector.shape_cast %366 : vector<16x32xf32> to vector<2x8x32xf32>
    "tpu.trace_start"() <{level = 10 : i32, message = "bqd,bkd->bqk"}> : () -> ()
    %cst_121 = arith.constant dense<0.000000e+00> : vector<2x8x8xf32>
    %368 = tpu.matmul %364, %260, %cst_121 {dimension_numbers = #tpu.dot_dimension_numbers<[2], [2], [1], [1], [0, 0, 0, 1, 1, 1], [0], [0]>} : vector<2x8x32xf32>, vector<2x8x32xf32>, vector<2x8x8xf32> -> vector<2x8x8xf32>
    "tpu.trace_stop"() : () -> ()
    %cst_122 = arith.constant 8.000000e+00 : f32
    %369 = vector.broadcast %cst_122 : f32 to vector<2x8x8xf32>
    %370 = arith.divf %368, %369 : vector<2x8x8xf32>
    %cst_123 = arith.constant 0.000000e+00 : f32
    %371 = vector.broadcast %cst_123 : f32 to vector<2x8x8xf32>
    %372 = arith.cmpf oeq, %40, %371 : vector<2x8x8xf32>
    %cst_124 = arith.constant -1.000000e+09 : f32
    %373 = vector.broadcast %cst_124 : f32 to vector<2x8x8xf32>
    %374 = arith.select %372, %373, %370 : vector<2x8x8xi1>, vector<2x8x8xf32>
    %cst_125 = arith.constant dense<0xFF800000> : vector<2x8xf32>
    %375 = vector.multi_reduction <maximumf>, %374, %cst_125 [2] : vector<2x8x8xf32> to vector<2x8xf32>
    %376 = vector.shape_cast %375 : vector<2x8xf32> to vector<2x8x1xf32>
    %377 = vector.broadcast %376 : vector<2x8x1xf32> to vector<2x8x8xf32>
    %378 = arith.subf %374, %377 : vector<2x8x8xf32>
    %379 = math.exp %378 : vector<2x8x8xf32>
    %cst_126 = arith.constant dense<0.000000e+00> : vector<2x8xf32>
    %380 = vector.multi_reduction <add>, %379, %cst_126 [2] : vector<2x8x8xf32> to vector<2x8xf32>
    %381 = vector.shape_cast %380 : vector<2x8xf32> to vector<2x8x1xf32>
    %382 = vector.broadcast %381 : vector<2x8x1xf32> to vector<2x8x8xf32>
    %383 = arith.divf %379, %382 : vector<2x8x8xf32>
    "tpu.trace_start"() <{level = 10 : i32, message = "bqk,bkd->bqd"}> : () -> ()
    %cst_127 = arith.constant dense<0.000000e+00> : vector<2x8x32xf32>
    %384 = tpu.matmul %383, %367, %cst_127 {dimension_numbers = #tpu.dot_dimension_numbers<[2], [1], [1], [2], [0, 0, 0, 1, 1, 2], [0], [0]>} : vector<2x8x8xf32>, vector<2x8x32xf32>, vector<2x8x32xf32> -> vector<2x8x32xf32>
    "tpu.trace_stop"() : () -> ()
    %385 = arith.addf %354, %384 : vector<2x8x32xf32>
    %386 = vector.shape_cast %385 : vector<2x8x32xf32> to vector<16x32xf32>
    %c7 = arith.constant 7 : index
    %c0_128 = arith.constant 0 : index
    %c0_129 = arith.constant 0 : index
    %387 = vector.load %arg7[%c7, %c0_128, %c0_129] : memref<8x32x32xf32, #tpu.memory_space<vmem>>, vector<1x32x32xf32>
    %388 = vector.shape_cast %387 : vector<1x32x32xf32> to vector<32x32xf32>
    %cst_130 = arith.constant dense<0.000000e+00> : vector<16x32xf32>
    %389 = tpu.matmul %386, %388, %cst_130 {dimension_numbers = #tpu.dot_dimension_numbers<[1], [0], [0], [1], [0, 0, 1, 1], [], []>} : vector<16x32xf32>, vector<32x32xf32>, vector<16x32xf32> -> vector<16x32xf32>
    %390 = arith.addf %389, %244 : vector<16x32xf32>
    %cst_131 = arith.constant dense<0.000000e+00> : vector<16xf32>
    %391 = vector.multi_reduction <add>, %390, %cst_131 [1] : vector<16x32xf32> to vector<16xf32>
    %392 = vector.shape_cast %391 : vector<16xf32> to vector<16x1xf32>
    %cst_132 = arith.constant 3.200000e+01 : f32
    %393 = vector.broadcast %cst_132 : f32 to vector<16x1xf32>
    %394 = arith.divf %392, %393 : vector<16x1xf32>
    %395 = vector.broadcast %394 : vector<16x1xf32> to vector<16x32xf32>
    %396 = arith.subf %390, %395 : vector<16x32xf32>
    %397 = arith.mulf %396, %396 : vector<16x32xf32>
    %cst_133 = arith.constant dense<0.000000e+00> : vector<16xf32>
    %398 = vector.multi_reduction <add>, %397, %cst_133 [1] : vector<16x32xf32> to vector<16xf32>
    %399 = vector.shape_cast %398 : vector<16xf32> to vector<16x1xf32>
    %cst_134 = arith.constant 3.100000e+01 : f32
    %400 = vector.broadcast %cst_134 : f32 to vector<16x1xf32>
    %401 = arith.divf %399, %400 : vector<16x1xf32>
    %402 = math.sqrt %401 : vector<16x1xf32>
    %cst_135 = arith.constant 9.99999997E-7 : f32
    %403 = vector.broadcast %cst_135 : f32 to vector<16x1xf32>
    %404 = arith.addf %402, %403 : vector<16x1xf32>
    %405 = vector.broadcast %394 : vector<16x1xf32> to vector<16x32xf32>
    %406 = arith.subf %390, %405 : vector<16x32xf32>
    %407 = vector.broadcast %404 : vector<16x1xf32> to vector<16x32xf32>
    %408 = arith.divf %406, %407 : vector<16x32xf32>
    %409 = vector.broadcast %245 : vector<1x32xf32> to vector<16x32xf32>
    %410 = arith.mulf %409, %408 : vector<16x32xf32>
    %411 = vector.broadcast %246 : vector<1x32xf32> to vector<16x32xf32>
    %412 = arith.addf %410, %411 : vector<16x32xf32>
    %c1_136 = arith.constant 1 : index
    %c0_137 = arith.constant 0 : index
    %c0_138 = arith.constant 0 : index
    %413 = vector.load %arg8[%c1_136, %c0_137, %c0_138] : memref<2x32x64xf32, #tpu.memory_space<vmem>>, vector<1x32x64xf32>
    %414 = vector.shape_cast %413 : vector<1x32x64xf32> to vector<32x64xf32>
    %cst_139 = arith.constant dense<0.000000e+00> : vector<16x64xf32>
    %415 = tpu.matmul %412, %414, %cst_139 {dimension_numbers = #tpu.dot_dimension_numbers<[1], [0], [0], [1], [0, 0, 1, 1], [], []>} : vector<16x32xf32>, vector<32x64xf32>, vector<16x64xf32> -> vector<16x64xf32>
    %416 = vector.broadcast %250 : vector<1x64xf32> to vector<16x64xf32>
    %417 = arith.addf %415, %416 : vector<16x64xf32>
    %cst_140 = arith.constant 0.000000e+00 : f32
    %418 = vector.broadcast %cst_140 : f32 to vector<16x64xf32>
    %419 = arith.maximumf %417, %418 : vector<16x64xf32>
    %c1_141 = arith.constant 1 : index
    %c0_142 = arith.constant 0 : index
    %c0_143 = arith.constant 0 : index
    %420 = vector.load %arg9[%c1_141, %c0_142, %c0_143] : memref<2x64x32xf32, #tpu.memory_space<vmem>>, vector<1x64x32xf32>
    %421 = vector.shape_cast %420 : vector<1x64x32xf32> to vector<64x32xf32>
    %cst_144 = arith.constant dense<0.000000e+00> : vector<16x32xf32>
    %422 = tpu.matmul %419, %421, %cst_144 {dimension_numbers = #tpu.dot_dimension_numbers<[1], [0], [0], [1], [0, 0, 1, 1], [], []>} : vector<16x64xf32>, vector<64x32xf32>, vector<16x32xf32> -> vector<16x32xf32>
    %423 = vector.broadcast %249 : vector<1x32xf32> to vector<16x32xf32>
    %424 = arith.addf %422, %423 : vector<16x32xf32>
    %425 = arith.addf %424, %412 : vector<16x32xf32>
    %cst_145 = arith.constant dense<0.000000e+00> : vector<16xf32>
    %426 = vector.multi_reduction <add>, %425, %cst_145 [1] : vector<16x32xf32> to vector<16xf32>
    %427 = vector.shape_cast %426 : vector<16xf32> to vector<16x1xf32>
    %cst_146 = arith.constant 3.200000e+01 : f32
    %428 = vector.broadcast %cst_146 : f32 to vector<16x1xf32>
    %429 = arith.divf %427, %428 : vector<16x1xf32>
    %430 = vector.broadcast %429 : vector<16x1xf32> to vector<16x32xf32>
    %431 = arith.subf %425, %430 : vector<16x32xf32>
    %432 = arith.mulf %431, %431 : vector<16x32xf32>
    %cst_147 = arith.constant dense<0.000000e+00> : vector<16xf32>
    %433 = vector.multi_reduction <add>, %432, %cst_147 [1] : vector<16x32xf32> to vector<16xf32>
    %434 = vector.shape_cast %433 : vector<16xf32> to vector<16x1xf32>
    %cst_148 = arith.constant 3.100000e+01 : f32
    %435 = vector.broadcast %cst_148 : f32 to vector<16x1xf32>
    %436 = arith.divf %434, %435 : vector<16x1xf32>
    %437 = math.sqrt %436 : vector<16x1xf32>
    %cst_149 = arith.constant 9.99999997E-7 : f32
    %438 = vector.broadcast %cst_149 : f32 to vector<16x1xf32>
    %439 = arith.addf %437, %438 : vector<16x1xf32>
    %440 = vector.broadcast %429 : vector<16x1xf32> to vector<16x32xf32>
    %441 = arith.subf %425, %440 : vector<16x32xf32>
    %442 = vector.broadcast %439 : vector<16x1xf32> to vector<16x32xf32>
    %443 = arith.divf %441, %442 : vector<16x32xf32>
    %444 = vector.broadcast %247 : vector<1x32xf32> to vector<16x32xf32>
    %445 = arith.mulf %444, %443 : vector<16x32xf32>
    %446 = vector.broadcast %248 : vector<1x32xf32> to vector<16x32xf32>
    %447 = arith.addf %445, %446 : vector<16x32xf32>
    %c0_150 = arith.constant 0 : index
    %c0_151 = arith.constant 0 : index
    %448 = vector.load %arg10[%c0_150, %c0_151] : memref<16x32xf32, #tpu.memory_space<vmem>>, vector<16x32xf32>
    tpu.vector_store %arg10[%c0_150, %c0_151], %447 {strides = array<i32>} : memref<16x32xf32, #tpu.memory_space<vmem>>, vector<16x32xf32>,
    return
  }
  func.func @transform_0(%arg0: i32) -> (i32, i32) {
    %c0_i32 = arith.constant 0 : i32
    %c0_i32_0 = arith.constant 0 : i32
    %c0_i32_1 = arith.constant 0 : i32
    return %c0_i32, %c0_i32_0 : i32, i32
  }
  func.func @transform_1(%arg0: i32) -> (i32, i32) {
    %c0_i32 = arith.constant 0 : i32
    %c0_i32_0 = arith.constant 0 : i32
    %c0_i32_1 = arith.constant 0 : i32
    return %c0_i32, %c0_i32_0 : i32, i32
  }
  func.func @transform_2(%arg0: i32) -> (i32, i32, i32) {
    %c0_i32 = arith.constant 0 : i32
    %c0_i32_0 = arith.constant 0 : i32
    %c0_i32_1 = arith.constant 0 : i32
    %c0_i32_2 = arith.constant 0 : i32
    return %c0_i32, %c0_i32_0, %c0_i32_1 : i32, i32, i32
  }
  func.func @transform_3(%arg0: i32) -> (i32, i32) {
    %c0_i32 = arith.constant 0 : i32
    %c0_i32_0 = arith.constant 0 : i32
    %c0_i32_1 = arith.constant 0 : i32
    return %c0_i32, %c0_i32_0 : i32, i32
  }
  func.func @transform_4(%arg0: i32) -> (i32, i32) {
    %c0_i32 = arith.constant 0 : i32
    %c0_i32_0 = arith.constant 0 : i32
    %c0_i32_1 = arith.constant 0 : i32
    return %c0_i32, %c0_i32_0 : i32, i32
  }
  func.func @transform_5(%arg0: i32) -> (i32, i32) {
    %c0_i32 = arith.constant 0 : i32
    %c0_i32_0 = arith.constant 0 : i32
    %c0_i32_1 = arith.constant 0 : i32
    return %c0_i32, %c0_i32_0 : i32, i32
  }
  func.func @transform_6(%arg0: i32) -> (i32, i32, i32) {
    %c0_i32 = arith.constant 0 : i32
    %c0_i32_0 = arith.constant 0 : i32
    %c0_i32_1 = arith.constant 0 : i32
    %c0_i32_2 = arith.constant 0 : i32
    return %c0_i32, %c0_i32_0, %c0_i32_1 : i32, i32, i32
  }
  func.func @transform_7(%arg0: i32) -> (i32, i32, i32) {
    %c0_i32 = arith.constant 0 : i32
    %c0_i32_0 = arith.constant 0 : i32
    %c0_i32_1 = arith.constant 0 : i32
    %c0_i32_2 = arith.constant 0 : i32
    return %c0_i32, %c0_i32_0, %c0_i32_1 : i32, i32, i32
  }
  func.func @transform_8(%arg0: i32) -> (i32, i32, i32) {
    %c0_i32 = arith.constant 0 : i32
    %c0_i32_0 = arith.constant 0 : i32
    %c0_i32_1 = arith.constant 0 : i32
    %c0_i32_2 = arith.constant 0 : i32
    return %c0_i32, %c0_i32_0, %c0_i32_1 : i32, i32, i32
  }
  func.func @transform_9(%arg0: i32) -> (i32, i32) {
    %c0_i32 = arith.constant 0 : i32
    %c0_i32_0 = arith.constant 0 : i32
    %c0_i32_1 = arith.constant 0 : i32
    return %c0_i32, %c0_i32_0 : i32, i32
  }
}

</mosaic_0001>

<bundles_post_ra>
// kernel: tpu_custom_call.1
= control target key start
LH: loop header
LB: loop body
LE: loop exit
PB: predicated region body
PF: predicated region fallthrough
CT: control target
= control target key end

     0   :  { %14 = vsyncpa [#allocation3], 0  ;;  %s5929_s0 = inlined_call_operand.vmem [shape: s32[16,1], index: 0, kind: input, shape index: {}]   ;;  %s5930_s1 = inlined_call_operand.hbm [shape: f32[16,32], index: 1, kind: input, shape index: {}]   ;;  %s5931_s2 = inlined_call_operand.vmem [shape: f32[2,1,8], index: 2, kind: input, shape index: {}]   ;;  %s5932_s3 = inlined_call_operand.vmem [shape: f32[56,32], index: 3, kind: input, shape index: {}]   ;;  %s5933_s4 = inlined_call_operand.hbm [shape: f32[12,32], index: 4, kind: input, shape index: {}]   ;;  %s5934_s5 = inlined_call_operand.hbm [shape: f32[2,64], index: 5, kind: input, shape index: {}]   ;;  %s5935_s6 = inlined_call_operand.vmem [shape: f32[8,32,32], index: 6, kind: input, shape index: {}]   ;;  %s5936_s7 = inlined_call_operand.hbm [shape: f32[2,32,64], index: 7, kind: input, shape index: {}]   ;;  %s5937_s8 = inlined_call_operand.vmem [shape: f32[2,64,32], index: 8, kind: input, shape index: {}]   ;;  %s5938_s9 = inlined_call_operand.hbm [shape: f32[16,32], index: 9, kind: output, shape index: {}]  }
   0x1   :  { %15 = vsyncpa [#allocation6], 0 }
   0x2   :  { %16 = vsyncpa [#allocation9], 0 }
   0x3   :  { %17 = vsyncpa [#allocation4], 0  ;;  %s5134_s30 = smov [#allocation5]   ;;  %s5135_s11 = smov [#allocation2]  }
   0x4   :  { %s41_s10 = sshll.u32 %s5134_s30, 4  ;;  %s25_s12 = sshll.u32 %s5135_s11, 4  ;;  %s42_s10 = int_to_ptr.vmem [resolvable:$true] %s41_s10  ;;  %s5194_s12 = int_to_ptr.vmem [resolvable:$true] %s25_s12 }
   0x5   :  { %s5016_s15 = scalar_lea.hbm %s5933_s4, 256 }
   0x6   :  { %p5017_p0 = scmp.ne.s32.totalorder %s5933_s4, %s5016_s15  ;;  %p5020_p1 = scmp.lt.u32.totalorder %s5016_s15, %s5933_s4 }
   0x8   :  { %p5022_p2 = pnand %p5020_p1, %p5017_p0 }
   0xa   :  { %5025 = shalt.err (!%p5022_p2)
}
   0xb   :  { %s5026_s20 = scalar_lea.vmem %s42_s10, 256  ;;  %p5031_p4 = scmp.lt.s32.totalorder %s42_s10, %s42_s10 }
   0xc   :  { %p5027_p3 = scmp.ne.s32.totalorder %s42_s10, %s5026_s20  ;;  %p5032_p5 = scmp.lt.s32.totalorder %s5026_s20, %s5026_s20 }
   0xe   :  { %p5033_p6 = por %p5032_p5, %p5031_p4 }
  0x10   :  { %p5034_p7 = pnand %p5033_p6, %p5027_p3 }
  0x12   :  { %5037 = shalt.err (!%p5034_p7)
}
  0x13   :  { %s5136_s21 = smov 128   ;;  %s5137_s22 = smov 8  }
  0x14   :  { %47 = dma.hbm_to_vmem [thread:$0]  %s5933_s4, 256, %s42_s10, [#allocation6], %s5136_s21, %s5136_s21, %s5137_s22  }
  0x15   :  { %s5038_s27 = scalar_lea.hbm %s5930_s1, 256 }
  0x16   :  { %p5039_p8 = scmp.ne.s32.totalorder %s5930_s1, %s5038_s27  ;;  %p5042_p9 = scmp.lt.u32.totalorder %s5038_s27, %s5930_s1 }
  0x18   :  { %p5044_p10 = pnand %p5042_p9, %p5039_p8 }
  0x1a   :  { %5047 = shalt.err (!%p5044_p10)
}
  0x1b   :  { %s5048_s13 = scalar_lea.vmem %s5194_s12, 256  ;;  %p5053_p12 = scmp.lt.s32.totalorder %s5194_s12, %s5194_s12 }
  0x1c   :  { %p5049_p11 = scmp.ne.s32.totalorder %s5194_s12, %s5048_s13  ;;  %p5054_p13 = scmp.lt.s32.totalorder %s5048_s13, %s5048_s13 }
  0x1e   :  { %p5055_p0 = por %p5054_p13, %p5053_p12 }
  0x20   :  { %p5056_p1 = pnand %p5055_p0, %p5049_p11 }
  0x22   :  { %5059 = shalt.err (!%p5056_p1)
}
  0x23   :  { %31 = dma.hbm_to_vmem [thread:$0]  %s5930_s1, 256, %s5194_s12, [#allocation3], %s5136_s21, %s5136_s21, %s5137_s22  }
  0x24   :  { %s5138_s14 = smov [#allocation7]   ;;  %s5139_s16 = smov [#allocation8]  }
  0x25   :  { %s54_s15 = sshll.u32 %s5138_s14, 4  ;;  %s65_s17 = sshll.u32 %s5139_s16, 4  ;;  %s55_s15 = int_to_ptr.vmem [resolvable:$true] %s54_s15  ;;  %s5231_s17 = int_to_ptr.vmem [resolvable:$true] %s65_s17 }
  0x26   :  { %s5060_s20 = scalar_lea.hbm %s5934_s5, 32 }
  0x27   :  { %p5061_p2 = scmp.ne.s32.totalorder %s5934_s5, %s5060_s20  ;;  %p5064_p3 = scmp.lt.u32.totalorder %s5060_s20, %s5934_s5 }
  0x29   :  { %p5066_p4 = pnand %p5064_p3, %p5061_p2 }
  0x2b   :  { %5069 = shalt.err (!%p5066_p4)
}
  0x2c   :  { %s5070_s1 = scalar_lea.vmem %s55_s15, 32  ;;  %p5075_p6 = scmp.lt.s32.totalorder %s55_s15, %s55_s15 }
  0x2d   :  { %p5071_p5 = scmp.ne.s32.totalorder %s55_s15, %s5070_s1  ;;  %p5076_p7 = scmp.lt.s32.totalorder %s5070_s1, %s5070_s1 }
  0x2f   :  { %p5077_p8 = por %p5076_p7, %p5075_p6 }
  0x31   :  { %p5078_p9 = pnand %p5077_p8, %p5071_p5 }
  0x33   :  { %5081 = shalt.err (!%p5078_p9)
}
  0x34   :  { %57 = dma.hbm_to_vmem [thread:$0]  %s5934_s5, 32, %s55_s15, [#allocation6]  }
  0x35   :  { %s5082_s30 = scalar_lea.hbm %s5936_s7, 1024 }
  0x36   :  { %p5083_p10 = scmp.ne.s32.totalorder %s5936_s7, %s5082_s30  ;;  %p5086_p11 = scmp.lt.u32.totalorder %s5082_s30, %s5936_s7 }
  0x38   :  { %p5088_p12 = pnand %p5086_p11, %p5083_p10 }
  0x3a   :  { %5091 = shalt.err (!%p5088_p12)
}
  0x3b   :  { %s5092_s14 = scalar_lea.vmem %s5231_s17, 1024  ;;  %p5097_p0 = scmp.lt.s32.totalorder %s5231_s17, %s5231_s17 }
  0x3c   :  { %p5093_p13 = scmp.ne.s32.totalorder %s5231_s17, %s5092_s14  ;;  %p5098_p1 = scmp.lt.s32.totalorder %s5092_s14, %s5092_s14 }
  0x3e   :  { %p5099_p2 = por %p5098_p1, %p5097_p0 }
  0x40   :  { %p5100_p3 = pnand %p5099_p2, %p5093_p13 }
  0x42   :  { %5103 = shalt.err (!%p5100_p3)
}
  0x43   :  { %71 = dma.hbm_to_vmem [thread:$0]  %s5936_s7, 1024, %s5231_s17, [#allocation9], %s5136_s21, %s5136_s21, %s5137_s22  }
  0x44   :  { %5126 = dma.done.wait [#allocation3], 256  }
  0x45   :  { %5127 = vsyncadd [#allocation3], 4294967040 }
  0x46   :  { %5128 = dma.done.wait [#allocation6], 288  }
  0x47   :  { %5129 = vsyncadd [#allocation6], 4294967008 }
  0x48   :  { %5130 = dma.done.wait [#allocation9], 1024  }
  0x49   :  { %5131 = vsyncadd [#allocation9], 4294966272  ;;  %v5140_v0 = vmov 0   ;;  %v86_v1 = vld [vmem:[%s5929_s0] sm:$0xff]  ;;  %v103_v3 = vld [vmem:[%s5932_s3 + $0x8] sm:$0xff]  ;;  %v5141_v13 = vmov 0.0   ;;  %v88_v14 = vlaneseq }
  0x4a   :  { %4910 = vset.pattern.permute.xlu0 %v5140_v0  ;;  %v102_v2 = vld [vmem:[%s5932_s3] sm:$0xff]  ;;  %v104_v4 = vld [vmem:[%s5932_s3 + $0x10] sm:$0xff]  ;;  %v105_v5 = vld [vmem:[%s5932_s3 + $0x18] sm:$0xff]  ;;  %vm109_vm0 = vcmask 457728   ;;  %vm200_vm3 = vcmask 261120   ;;  %vm5142_vm8 = vmmov 0  }
  0x4b   :  { %91 = vperm.xlu0 %4910, %v86_v1   ;;  %v87_v6 = vld [vmem:[%s5929_s0 + $0x8] sm:$0xff]  ;;  %v4752_v7 = vpack.c.bf16 %v103_v3, %v102_v2  ;;  %v4756_v8 = vpack.c.bf16 %v105_v5, %v104_v4  ;;  %v106_v9 = vld [vmem:[%s5932_s3 + $0x20] sm:$0xff]  ;;  %v108_v12 = vld [vmem:[%s5932_s3 + $0x30] sm:$0xff]  ;;  %v5294_v15 = vand.u32 127, %v88_v14  ;;  %v5323_v63 = vshrl.u32 %v88_v14, 7 }
  0x4c   :  { %v107_v10 = vld [vmem:[%s5932_s3 + $0x28] sm:$0xff]  ;;  %v193_v22 = vld [vmem:[#allocation2] sm:$0xff]  ;;  %v194_v25 = vld [vmem:[#allocation2 + $0x8] sm:$0xff]  ;;  %vm682_vm14 = vcmask 64512  }
  0x4d   :  { %4753 = vmatprep.subr.bf16.mxu0 %v4752_v7  ;;  %v4760_v11 = vpack.c.bf16 %v107_v10, %v106_v9  ;;  %v269_v40 = vld [vmem:[%s5935_s6] sm:$0xff]  ;;  %v270_v41 = vld [vmem:[%s5935_s6 + $0x8] sm:$0xff]  ;;  %v271_v42 = vld [vmem:[%s5935_s6 + $0x10] sm:$0xff]  ;;  %v5326_v2 = vsub.s32 0, %v5323_v63  ;;  %v5331_v4 = vsub.s32 1, %v5323_v63  ;;  %vm705_vm9 = vcmp.ge.s32.totalorder %v5294_v15, 8 }
  0x4e   :  { %4755 = vmatpush3.bf16.msra.mxu0 %v4752_v7  ;;  %v4764_v43 = vpack.c.bf16 %v270_v41, %v269_v40  ;;  %v272_v44 = vld [vmem:[%s5935_s6 + $0x18] sm:$0xff]  ;;  %v4164_v46 = vld [vmem:[%s5935_s6 + $0x20] sm:$0xff]  ;;  %v4165_v47 = vld [vmem:[%s5935_s6 + $0x28] sm:$0xff]  ;;  %vm706_vm10 = vcmp.lt.s32.totalorder %v5294_v15, 16  ;;  %vm515_vm11 = vcmp.lt.s32.totalorder %v5294_v15, 8 }
  0x4f   :  { %94 = vperm.xlu0 %4910, %v87_v6   ;;  %4757 = vmatprep.subr.bf16.mxu0 %v4756_v8  ;;  %v4768_v45 = vpack.c.bf16 %v272_v44, %v271_v42  ;;  %v4772_v48 = vpack.c.bf16 %v4165_v47, %v4164_v46  ;;  %v5328_v3 = vld [vmem:[#allocation5] sm:$0xff]  ;;  %v4166_v14 = vld [vmem:[%s5935_s6 + $0x30] sm:$0xff]  ;;  %vm707_vm12 = vmand %vm705_vm9, %vm706_vm10 }
  0x50   :  { %4765 = vmatprep.subr.bf16.mxu1 %v4764_v43  ;;  %v246_v5 = vrot.slane %v5328_v3, %v5326_v2  ;;  %v5438_v40 = vld [vmem:[%s5931_s2] ss:$0 sm:$0xff] }
  0x51   :  { %4767 = vmatpush3.bf16.msra.mxu1 %v4764_v43  ;;  %vm678_vm13 = vcmp.eq.f32.partialorder %v5438_v40, 0.0 }
  0x52   :  { %4759 = vmatpush3.bf16.msra.mxu0 %v4756_v8  ;;  %4769 = vmatprep.subr.bf16.mxu1 %v4768_v45  ;;  %v252_v8 = vrot.slane %v5328_v3, %v5331_v4 }
  0x53   :  { %4761 = vmatprep.subr.bf16.mxu0 %v4760_v11 }
  0x55   :  { %4771 = vmatpush3.bf16.msra.mxu1 %v4768_v45 }
  0x56   :  { %4763 = vmatpush3.bf16.msra.mxu0 %v4760_v11  ;;  %4773 = vmatprep.subr.bf16.mxu1 %v4772_v48 }
  0x57   :  { %4439 = vmatprep.subr.mxu0 %v108_v12 }
  0x5a   :  { %4440 = vmatpush3.msra.mxu0 %v108_v12 }
  0x5b   :  { %4487 = vmatprep.subr.mxu0 %v5141_v13 }
  0xca   :  { %v92_v16 = vpop.permute.xlu0 %91 }
  0xcb   :  { %vm96_vm1 = vcmp.eq.s32.totalorder %v92_v16, %v5294_v15  ;;  %v4167_v16 = vld [vmem:[%s5935_s6 + $0x38] sm:$0xff] }
  0xcc   :  { %v4156_v17 = vsel %vm96_vm1, 1.0, %v5141_v13  ;;  %vm1179_vm1 = vcmp.lt.s32.totalorder %v5294_v15, 24 }
  0xcd   :  { %4441 = vmatprep.mubr.msk.f32.mxu0 %vm109_vm0, %v4156_v17 }
  0xce   :  { %v95_v18 = vpop.permute.xlu0 %94 }
  0xcf   :  { %vm97_vm2 = vcmp.eq.s32.totalorder %v95_v18, %v5294_v15 }
  0xd0   :  { %v4157_v19 = vsel %vm97_vm2, 1.0, %v5141_v13 }
  0xd1   :  { %4442 = vmatmul.mubr.msk.f32.vlgmr.msra.gmra.mrb[0].mxu0 %vm109_vm0, %v4157_v19  ;;  %v4776_v19 = vpack.c.bf16 %v4167_v16, %v4166_v14  ;;  %vm1178_vm0 = vcmp.ge.s32.totalorder %v5294_v15, 16 }
  0xd2   :  { %4489 = vmatprep.mubr.msk.f32.mxu0 %vm5142_vm8, %v5141_v13  ;;  %vm1180_vm2 = vmand %vm1178_vm0, %vm1179_vm1 }
 0x1a4   :  { %v4443_v20 = vpop.f32.mrb[0].mxu0 }
 0x1a5   :  { %v182_v21 = vpop.f32.mrb[1].mxu0  ;;  %v192_v23 = vmul.f32 5.656854, %v4443_v20  ;;  %v4170_v20 = vld [vmem:[%s5935_s6 + $0x40] sm:$0xff] }
 0x1a6   :  { %v191_v24 = vmul.f32 5.656854, %v182_v21  ;;  %v4171_v21 = vld [vmem:[%s5935_s6 + $0x48] sm:$0xff] }
 0x1a7   :  { %v196_v28 = vadd.f32 %v194_v25, %v192_v23  ;;  %v4172_v23 = vld [vmem:[%s5935_s6 + $0x50] sm:$0xff] }
 0x1a8   :  { %v195_v26 = vadd.f32 %v193_v22, %v191_v24  ;;  %v4780_v22 = vpack.c.bf16 %v4171_v21, %v4170_v20  ;;  %v4173_v24 = vld [vmem:[%s5935_s6 + $0x58] sm:$0xff] }
 0x1a9   :  { %v204_v29 = vsel %vm200_vm3, %v196_v28, 0.0  ;;  %v4784_v25 = vpack.c.bf16 %v4173_v24, %v4172_v23 }
 0x1aa   :  { %v201_v27 = vsel %vm200_vm3, %v195_v26, 0.0 }
 0x1ab   :  { %202 = vadd.xlane.f32.xlu1 %v201_v27 }
 0x1af   :  { %205 = vadd.xlane.f32.xlu1 %v204_v29  ;;  %v5387_v29 = vsel %vm707_vm12, 1.0, %v5141_v13  ;;  %vm2077_vm12 = vcmask 523264  }
 0x238   :  { %v203_v30 = vpop.xlane.xlu1 %202 }
 0x239   :  { %v208_v31 = vmul.f32 0.03125, %v203_v30 }
 0x23b   :  { %v210_v32 = vsub.f32 %v195_v26, %v208_v31 }
 0x23c   :  { %v206_v33 = vpop.xlane.xlu1 %205 }
 0x23d   :  { %v209_v34 = vmul.f32 0.03125, %v206_v33  ;;  %v212_v35 = vmul.f32 %v210_v32, %v210_v32 }
 0x23f   :  { %v211_v36 = vsub.f32 %v196_v28, %v209_v34  ;;  %v214_v37 = vsel %vm200_vm3, %v212_v35, 0.0  ;;  %v5384_v28 = vsel %vm515_vm11, 1.0, %v5141_v13 }
 0x240   :  { %215 = vadd.xlane.f32.xlu0 %v214_v37 }
 0x241   :  { %v213_v38 = vmul.f32 %v211_v36, %v211_v36 }
 0x243   :  { %v217_v39 = vsel %vm200_vm3, %v213_v38, 0.0 }
 0x244   :  { %218 = vadd.xlane.f32.xlu1 %v217_v39 }
 0x2cd   :  { %v216_v49 = vpop.xlane.xlu0 %215 }
 0x2ce   :  { %v221_v50 = vmul.f32 0.032258064, %v216_v49 }
 0x2d0   :  { %4911 = vrsqrt.f32 %v221_v50  ;;  %vm225_vm4 = vcmp.eq.f32.partialorder %v221_v50, inf  ;;  %v228_v55 = vand.u32 2147483648, %v221_v50  ;;  %vm227_vm5 = vcmp.eq.f32.partialorder %v221_v50, 0.0 }
 0x2d1   :  { %v219_v51 = vpop.xlane.xlu1 %218 }
 0x2d2   :  { %v222_v52 = vmul.f32 0.032258064, %v219_v51 }
 0x2d4   :  { %4913 = vrsqrt.f32 %v222_v52  ;;  %vm232_vm6 = vcmp.eq.f32.partialorder %v222_v52, inf  ;;  %v235_v61 = vand.u32 2147483648, %v222_v52  ;;  %vm234_vm7 = vcmp.eq.f32.partialorder %v222_v52, 0.0 }
 0x2da   :  { %v4912_v53 = vpop.eup %4911 }
 0x2db   :  { %v224_v54 = vmul.f32 %v4912_v53, %v221_v50 }
 0x2dd   :  { %v226_v56 = vsel %vm225_vm4, %v221_v50, %v224_v54  ;;  %v5447_v50 = vld [vmem:[%s5931_s2 + $0x1] ss:$0 sm:$0xff]  ;;  %vm1507_vm4 = vcmp.ge.s32.totalorder %v5294_v15, 24 }
 0x2de   :  { %v4914_v57 = vpop.eup %4913  ;;  %v229_v58 = vsel %vm227_vm5, %v228_v55, %v226_v56  ;;  %vm679_vm15 = vcmp.eq.f32.partialorder %v5447_v50, 0.0  ;;  %vm1508_vm5 = vcmp.lt.s32.totalorder %v5294_v15, 32 }
 0x2df   :  { %v237_v59 = vadd.f32 1e-06, %v229_v58  ;;  %v231_v60 = vmul.f32 %v4914_v57, %v222_v52 }
 0x2e1   :  { %4915 = vrcp.f32 %v237_v59  ;;  %v233_v62 = vsel %vm232_vm6, %v222_v52, %v231_v60  ;;  %vm1509_vm6 = vmand %vm1507_vm4, %vm1508_vm5 }
 0x2e2   :  { %v236_v0 = vsel %vm234_vm7, %v235_v61, %v233_v62 }
 0x2e3   :  { %v238_v1 = vadd.f32 1e-06, %v236_v0 }
 0x2e5   :  { %4917 = vrcp.f32 %v238_v1 }
 0x2eb   :  { %v4916_v6 = vpop.eup %4915 }
 0x2ec   :  { %v240_v7 = vmul.f32 %v4916_v6, %v210_v32 }
 0x2ee   :  { %v247_v9 = vmul.f32 %v246_v5, %v240_v7 }
 0x2ef   :  { %v4918_v10 = vpop.eup %4917 }
 0x2f0   :  { %v5337_v11 = vadd.f32 %v252_v8, %v247_v9  ;;  %v242_v12 = vmul.f32 %v4918_v10, %v211_v36 }
 0x2f2   :  { %4452 = vmatprep.mubr.msk.f32.mxu1 %vm200_vm3, %v5337_v11  ;;  %v248_v17 = vmul.f32 %v246_v5, %v242_v12 }
 0x2f4   :  { %v5347_v18 = vadd.f32 %v252_v8, %v248_v17 }
 0x2f6   :  { %4453 = vmatmul.mubr.msk.f32.vlgmr.msra.gmra.mrb[0].mxu1 %vm200_vm3, %v5347_v18 }
 0x2f7   :  { %4775 = vmatpush3.bf16.msra.mxu1 %v4772_v48  ;;  %4463 = vmatprep.mubr.msk.f32.mxu1 %vm200_vm3, %v5337_v11 }
 0x2f8   :  { %4777 = vmatprep.subr.bf16.mxu1 %v4776_v19 }
 0x2fb   :  { %4779 = vmatpush3.bf16.msra.mxu1 %v4776_v19 }
 0x2fc   :  { %4781 = vmatprep.subr.bf16.mxu1 %v4780_v22 }
 0x2fe   :  { %4464 = vmatmul.mubr.msk.f32.vlgmr.msra.gmra.mrb[2].mxu1 %vm200_vm3, %v5347_v18 }
 0x2ff   :  { %4783 = vmatpush3.bf16.msra.mxu1 %v4780_v22  ;;  %4474 = vmatprep.mubr.msk.f32.mxu1 %vm200_vm3, %v5337_v11 }
 0x300   :  { %4785 = vmatprep.subr.bf16.mxu1 %v4784_v25 }
 0x303   :  { %4787 = vmatpush3.bf16.msra.mxu1 %v4784_v25 }
 0x304   :  { %4477 = vmatprep.subr.mxu1 %v5141_v13 }
 0x306   :  { %4475 = vmatmul.mubr.msk.f32.vlgmr.msra.gmra.mrb[4].mxu1 %vm200_vm3, %v5347_v18 }
 0x307   :  { %4479 = vmatprep.mubr.msk.f32.mxu1 %vm5142_vm8, %v5141_v13 }
 0x3c9   :  { %v5376_v26 = vpop.f32.mrb[0].mxu1 }
 0x3ca   :  { %v5378_v27 = vpop.f32.mrb[1].mxu1  ;;  %v520_v34 = vmul.f32 %v5376_v26, %v5384_v28  ;;  %v711_v38 = vmul.f32 %v5376_v26, %v5387_v29 }
 0x3cb   :  { %v519_v32 = vmul.f32 %v5384_v28, %v5378_v27  ;;  %v710_v33 = vmul.f32 %v5387_v29, %v5378_v27 }
 0x3d1   :  { %v5389_v30 = vpop.f32.mrb[2].mxu1 }
 0x3d2   :  { %v5391_v31 = vpop.f32.mrb[3].mxu1 }
 0x3d3   :  { %4478 = vmatpush3.xpose.msk.msra.mxu1 %vm200_vm3, %v5391_v31  ;;  %4488 = vmatpush3.xpose.msk.msra.mxu0 %vm200_vm3, %v5391_v31 }
 0x3d4   :  { %4482 = vmatprep.subr.mxu1 %v5141_v13  ;;  %4497 = vmatprep.subr.mxu0 %v5141_v13 }
 0x3d6   :  { %4480 = vmatmul.mubr.msk.f32.vlgmr.msra.gmra.mrb[6].mxu1 %vm200_vm3, %v519_v32  ;;  %4490 = vmatmul.mubr.msk.f32.vlgmr.msra.gmra.mrb[2].mxu0 %vm200_vm3, %v710_v33 }
 0x3d7   :  { %4483 = vmatpush3.xpose.msk.msra.mxu1 %vm200_vm3, %v5389_v30  ;;  %4484 = vmatprep.mubr.msk.f32.mxu1 %vm5142_vm8, %v5141_v13 }
 0x3d8   :  { %4492 = vmatprep.subr.mxu1 %v5141_v13  ;;  %4499 = vmatprep.mubr.msk.f32.mxu0 %vm5142_vm8, %v5141_v13 }
 0x3d9   :  { %v5414_v35 = vpop.f32.mrb[4].mxu1 }
 0x3da   :  { %v5416_v36 = vpop.f32.mrb[5].mxu1  ;;  %4485 = vmatmul.mubr.msk.f32.vlgmr.msra.gmra.mrb[8].mxu1 %vm200_vm3, %v520_v34  ;;  %v713_v39 = vmul.f32 %v5414_v35, %v5387_v29 }
 0x3db   :  { %v712_v37 = vmul.f32 %v5387_v29, %v5416_v36  ;;  %4493 = vmatpush3.xpose.msk.msra.mxu1 %vm200_vm3, %v5389_v30  ;;  %4494 = vmatprep.mubr.msk.f32.mxu1 %vm5142_vm8, %v5141_v13 }
 0x3dc   :  { %4502 = vmatprep.subr.mxu1 %v5141_v13 }
 0x3dd   :  { %4498 = vmatpush3.msra.mxu0 %v712_v37 }
 0x3de   :  { %4495 = vmatmul.mubr.msk.f32.vlgmr.msra.gmra.mrb[10].mxu1 %vm200_vm3, %v711_v38  ;;  %4507 = vmatprep.subr.mxu0 %v5141_v13 }
 0x3df   :  { %4503 = vmatpush3.msra.mxu1 %v713_v39  ;;  %4504 = vmatprep.mubr.msk.f32.mxu1 %vm5142_vm8, %v5141_v13  ;;  %v521_v39 = vmul.f32 %v5384_v28, %v5416_v36 }
 0x3e0   :  { %4512 = vmatprep.subr.mxu1 %v5141_v13 }
 0x4a9   :  { %v595_v41 = vpop.f32.mrb[6].mxu1  ;;  %v783_v42 = vpop.f32.mrb[2].mxu0 }
 0x4aa   :  { %v860_v43 = vmul.f32 0.125, %v783_v42  ;;  %v4481_v44 = vpop.f32.mrb[7].mxu1  ;;  %v4491_v45 = vpop.f32.mrb[3].mxu0  ;;  %v676_v52 = vmul.f32 0.125, %v595_v41 }
 0x4ab   :  { %v522_v44 = vmul.f32 %v5414_v35, %v5384_v28 }
 0x4ac   :  { %v862_v46 = vsel %vm678_vm13, -1e+09, %v860_v43  ;;  %v680_v58 = vsel %vm678_vm13, -1e+09, %v676_v52 }
 0x4ad   :  { %v671_v47 = vpop.f32.mrb[8].mxu1  ;;  %v864_v48 = vsel %vm682_vm14, %v862_v46, -inf  ;;  %v683_v59 = vsel %vm682_vm14, %v680_v58, -inf }
 0x4ae   :  { %865 = vmax.xlane.f32.xlu1 %v864_v48  ;;  %v4486_v49 = vpop.f32.mrb[9].mxu1  ;;  %v677_v57 = vmul.f32 0.125, %v671_v47  ;;  %v5478_v47 = vsel %vm1180_vm2, 1.0, %v5141_v13 }
 0x4af   :  { %v1183_v49 = vmul.f32 %v5478_v47, %v5378_v27  ;;  %v1185_v52 = vmul.f32 %v5478_v47, %v5416_v36 }
 0x4b0   :  { %v681_v60 = vsel %vm679_vm15, -1e+09, %v677_v57 }
 0x4b1   :  { %v856_v51 = vpop.f32.mrb[10].mxu1  ;;  %v686_v61 = vsel %vm682_vm14, %v681_v60, -inf }
 0x4b2   :  { %v861_v53 = vmul.f32 0.125, %v856_v51  ;;  %v4496_v54 = vpop.f32.mrb[11].mxu1 }
 0x4b3   :  { %v1186_v54 = vmul.f32 %v5414_v35, %v5478_v47 }
 0x4b4   :  { %v863_v55 = vsel %vm679_vm15, -1e+09, %v861_v53  ;;  %v1184_v53 = vmul.f32 %v5376_v26, %v5478_v47 }
 0x4b5   :  { %v867_v56 = vsel %vm682_vm14, %v863_v55, -inf }
 0x4b6   :  { %868 = vmax.xlane.f32.xlu1 %v867_v56 }
 0x4ba   :  { %684 = vmax.xlane.f32.xlu1 %v683_v59 }
 0x4be   :  { %687 = vmax.xlane.f32.xlu1 %v686_v61 }
 0x53b   :  { %v866_v62 = vpop.xlane.xlu1 %865 }
 0x53c   :  { %v870_v0 = vsub.f32 %v862_v46, %v866_v62 }
 0x53e   :  { %v872_v1 = vmul.f32 1.442695, %v870_v0 }
 0x540   :  { %4919 = vpow2.f32 %v872_v1 }
 0x543   :  { %v869_v5 = vpop.xlane.xlu1 %868 }
 0x544   :  { %v871_v6 = vsub.f32 %v863_v55, %v869_v5 }
 0x546   :  { %v874_v7 = vmul.f32 1.442695, %v871_v6 }
 0x547   :  { %v685_v8 = vpop.xlane.xlu1 %684 }
 0x548   :  { %4921 = vpow2.f32 %v874_v7  ;;  %v689_v9 = vsub.f32 %v680_v58, %v685_v8 }
 0x54a   :  { %v4920_v10 = vpop.eup %4919  ;;  %v691_v12 = vmul.f32 1.442695, %v689_v9 }
 0x54b   :  { %v688_v14 = vpop.xlane.xlu1 %687  ;;  %v876_v16 = vsel %vm682_vm14, %v4920_v10, 0.0 }
 0x54c   :  { %4923 = vpow2.f32 %v691_v12  ;;  %v690_v17 = vsub.f32 %v681_v60, %v688_v14  ;;  %877 = vadd.xlane.f32.xlu1 %v876_v16 }
 0x54e   :  { %v693_v19 = vmul.f32 1.442695, %v690_v17 }
 0x550   :  { %4925 = vpow2.f32 %v693_v19 }
 0x552   :  { %v4922_v20 = vpop.eup %4921 }
 0x553   :  { %v879_v21 = vsel %vm682_vm14, %v4922_v20, 0.0 }
 0x554   :  { %880 = vadd.xlane.f32.xlu1 %v879_v21 }
 0x556   :  { %v4924_v22 = vpop.eup %4923 }
 0x557   :  { %v695_v23 = vsel %vm682_vm14, %v4924_v22, 0.0 }
 0x558   :  { %696 = vadd.xlane.f32.xlu1 %v695_v23  ;;  %v5519_v23 = vsel %vm1509_vm6, 1.0, %v5141_v13 }
 0x559   :  { %v1514_v15 = vmul.f32 %v5519_v23, %v5416_v36 }
 0x55a   :  { %v4926_v24 = vpop.eup %4925 }
 0x55b   :  { %v698_v25 = vsel %vm682_vm14, %v4926_v24, 0.0 }
 0x55c   :  { %699 = vadd.xlane.f32.xlu0 %v698_v25  ;;  %v1512_v25 = vmul.f32 %v5519_v23, %v5378_v27  ;;  %v1515_v27 = vmul.f32 %v5414_v35, %v5519_v23 }
 0x5d9   :  { %v878_v32 = vpop.xlane.xlu1 %877 }
 0x5da   :  { %4927 = vrcp.f32 %v878_v32 }
 0x5e1   :  { %v881_v33 = vpop.xlane.xlu1 %880 }
 0x5e2   :  { %4929 = vrcp.f32 %v881_v33 }
 0x5e4   :  { %v4928_v34 = vpop.eup %4927 }
 0x5e5   :  { %v883_v37 = vmul.f32 %v4928_v34, %v4920_v10  ;;  %v697_v38 = vpop.xlane.xlu1 %696 }
 0x5e6   :  { %4931 = vrcp.f32 %v697_v38 }
 0x5e7   :  { %4500 = vmatmul.mubr.msk.f32.vlgmr.msra.gmra.mrb[4].mxu0 %vm682_vm14, %v883_v37 }
 0x5e8   :  { %4508 = vmatpush3.msra.mxu0 %v521_v39  ;;  %4509 = vmatprep.mubr.msk.f32.mxu0 %vm5142_vm8, %v5141_v13 }
 0x5e9   :  { %v700_v41 = vpop.xlane.xlu0 %699  ;;  %4517 = vmatprep.subr.mxu0 %v5141_v13 }
 0x5ea   :  { %4933 = vrcp.f32 %v700_v41 }
 0x5ec   :  { %v4930_v42 = vpop.eup %4929 }
 0x5ed   :  { %v885_v43 = vmul.f32 %v4930_v42, %v4922_v20 }
 0x5ef   :  { %4505 = vmatmul.mubr.msk.f32.vlgmr.msra.gmra.mrb[12].mxu1 %vm682_vm14, %v885_v43 }
 0x5f0   :  { %v4932_v45 = vpop.eup %4931  ;;  %4513 = vmatpush3.msra.mxu1 %v522_v44  ;;  %4514 = vmatprep.mubr.msk.f32.mxu1 %vm5142_vm8, %v5141_v13 }
 0x5f1   :  { %v702_v46 = vmul.f32 %v4932_v45, %v4924_v22  ;;  %4522 = vmatprep.subr.mxu1 %v5141_v13 }
 0x5f3   :  { %4510 = vmatmul.mubr.msk.f32.vlgmr.msra.gmra.mrb[4].mxu0 %vm682_vm14, %v702_v46 }
 0x5f4   :  { %v4934_v48 = vpop.eup %4933  ;;  %4518 = vmatpush3.xpose.msk.msra.mxu0 %vm200_vm3, %v5391_v31  ;;  %4519 = vmatprep.mubr.msk.f32.mxu0 %vm5142_vm8, %v5141_v13 }
 0x5f5   :  { %v704_v51 = vmul.f32 %v4934_v48, %v4926_v24  ;;  %4527 = vmatprep.subr.mxu0 %v5141_v13 }
 0x5f7   :  { %4515 = vmatmul.mubr.msk.f32.vlgmr.msra.gmra.mrb[12].mxu1 %vm682_vm14, %v704_v51  ;;  %4520 = vmatmul.mubr.msk.f32.vlgmr.msra.gmra.mrb[6].mxu0 %vm200_vm3, %v1183_v49 }
 0x5f8   :  { %4523 = vmatpush3.xpose.msk.msra.mxu1 %vm200_vm3, %v5389_v30  ;;  %4528 = vmatpush3.msra.mxu0 %v1185_v52 }
 0x5f9   :  { %4524 = vmatprep.mubr.msk.f32.mxu1 %vm5142_vm8, %v5141_v13  ;;  %4532 = vmatprep.subr.mxu1 %v5141_v13 }
 0x5fa   :  { %4529 = vmatprep.mubr.msk.f32.mxu0 %vm5142_vm8, %v5141_v13  ;;  %4537 = vmatprep.subr.mxu0 %v5141_v13 }
 0x5fb   :  { %4525 = vmatmul.mubr.msk.f32.vlgmr.msra.gmra.mrb[14].mxu1 %vm200_vm3, %v1184_v53 }
 0x5fc   :  { %4533 = vmatpush3.msra.mxu1 %v1186_v54  ;;  %4534 = vmatprep.mubr.msk.f32.mxu1 %vm5142_vm8, %v5141_v13  ;;  %v4204_v54 = vld [vmem:[%s5935_s6 + $0x60] sm:$0xff] }
 0x5fd   :  { %4542 = vmatprep.subr.mxu1 %v5141_v13 }
 0x6ca   :  { %v1256_v55 = vpop.f32.mrb[6].mxu0 }
 0x6cb   :  { %v1333_v56 = vmul.f32 0.125, %v1256_v55  ;;  %v4521_v57 = vpop.f32.mrb[7].mxu0  ;;  %v4205_v55 = vld [vmem:[%s5935_s6 + $0x68] sm:$0xff] }
 0x6cd   :  { %v1335_v58 = vsel %vm678_vm13, -1e+09, %v1333_v56  ;;  %v4788_v56 = vpack.c.bf16 %v4205_v55, %v4204_v54 }
 0x6ce   :  { %v1329_v59 = vpop.f32.mrb[14].mxu1  ;;  %v1337_v60 = vsel %vm682_vm14, %v1335_v58, -inf }
 0x6cf   :  { %v1334_v61 = vmul.f32 0.125, %v1329_v59  ;;  %v4526_v62 = vpop.f32.mrb[15].mxu1  ;;  %1338 = vmax.xlane.f32.xlu1 %v1337_v60 }
 0x6d1   :  { %v1336_v0 = vsel %vm679_vm15, -1e+09, %v1334_v61 }
 0x6d2   :  { %v1340_v1 = vsel %vm682_vm14, %v1336_v0, -inf }
 0x6d3   :  { %1341 = vmax.xlane.f32.xlu0 %v1340_v1  ;;  %v4207_v1 = vld [vmem:[%s5935_s6 + $0x78] sm:$0xff] }
 0x75c   :  { %v1339_v5 = vpop.xlane.xlu1 %1338 }
 0x75d   :  { %v1343_v6 = vsub.f32 %v1335_v58, %v1339_v5 }
 0x75f   :  { %v1345_v7 = vmul.f32 1.442695, %v1343_v6 }
 0x760   :  { %v1342_v8 = vpop.xlane.xlu0 %1341 }
 0x761   :  { %4935 = vpow2.f32 %v1345_v7  ;;  %v1344_v9 = vsub.f32 %v1336_v0, %v1342_v8  ;;  %v4206_v0 = vld [vmem:[%s5935_s6 + $0x70] sm:$0xff] }
 0x762   :  { %v4792_v5 = vpack.c.bf16 %v4207_v1, %v4206_v0  ;;  %v1964_v1 = vsub.s32 2, %v5323_v63 }
 0x763   :  { %v1347_v10 = vmul.f32 1.442695, %v1344_v9 }
 0x765   :  { %4937 = vpow2.f32 %v1347_v10 }
 0x76b   :  { %v4936_v12 = vpop.eup %4935 }
 0x76c   :  { %v1349_v14 = vsel %vm682_vm14, %v4936_v12, 0.0 }
 0x76d   :  { %1350 = vadd.xlane.f32.xlu1 %v1349_v14 }
 0x76f   :  { %v4938_v16 = vpop.eup %4937 }
 0x770   :  { %v1352_v17 = vsel %vm682_vm14, %v4938_v16, 0.0 }
 0x771   :  { %1353 = vadd.xlane.f32.xlu0 %v1352_v17 }
 0x7fa   :  { %v1351_v19 = vpop.xlane.xlu1 %1350 }
 0x7fb   :  { %4939 = vrcp.f32 %v1351_v19 }
 0x7fe   :  { %v1354_v20 = vpop.xlane.xlu0 %1353 }
 0x7ff   :  { %4941 = vrcp.f32 %v1354_v20 }
 0x805   :  { %v4940_v21 = vpop.eup %4939 }
 0x806   :  { %v1356_v22 = vmul.f32 %v4940_v21, %v4936_v12 }
 0x808   :  { %4530 = vmatmul.mubr.msk.f32.vlgmr.msra.gmra.mrb[4].mxu0 %vm682_vm14, %v1356_v22 }
 0x809   :  { %v4942_v24 = vpop.eup %4941  ;;  %4538 = vmatpush3.xpose.msk.msra.mxu0 %vm200_vm3, %v5391_v31  ;;  %4539 = vmatprep.mubr.msk.f32.mxu0 %vm5142_vm8, %v5141_v13  ;;  %v1513_v31 = vmul.f32 %v5376_v26, %v5519_v23 }
 0x80a   :  { %v1358_v32 = vmul.f32 %v4942_v24, %v4938_v16  ;;  %4547 = vmatprep.subr.mxu0 %v5141_v13 }
 0x80c   :  { %4535 = vmatmul.mubr.msk.f32.vlgmr.msra.gmra.mrb[12].mxu1 %vm682_vm14, %v1358_v32  ;;  %4540 = vmatmul.mubr.msk.f32.vlgmr.msra.gmra.mrb[8].mxu0 %vm200_vm3, %v1512_v25 }
 0x80d   :  { %4543 = vmatpush3.xpose.msk.msra.mxu1 %vm200_vm3, %v5389_v30  ;;  %4548 = vmatpush3.msra.mxu0 %v1514_v15 }
 0x80e   :  { %4544 = vmatprep.mubr.msk.f32.mxu1 %vm5142_vm8, %v5141_v13  ;;  %4552 = vmatprep.subr.mxu1 %v5141_v13 }
 0x80f   :  { %4549 = vmatprep.mubr.msk.f32.mxu0 %vm5142_vm8, %v5141_v13  ;;  %4789 = vmatprep.subr.bf16.mxu0 %v4788_v56 }
 0x810   :  { %4545 = vmatmul.mubr.msk.f32.vlgmr.msra.gmra.mrb[16].mxu1 %vm200_vm3, %v1513_v31 }
 0x811   :  { %4553 = vmatpush3.msra.mxu1 %v1515_v27  ;;  %4554 = vmatprep.mubr.msk.f32.mxu1 %vm5142_vm8, %v5141_v13 }
 0x8df   :  { %v1585_v30 = vpop.f32.mrb[8].mxu0 }
 0x8e0   :  { %v1662_v36 = vmul.f32 0.125, %v1585_v30  ;;  %v4541_v26 = vpop.f32.mrb[9].mxu0  ;;  %v1975_v30 = vld [vmem:[#allocation8 + $0x8] sm:$0xff] }
 0x8e2   :  { %v1664_v33 = vsel %vm678_vm13, -1e+09, %v1662_v36  ;;  %v1976_v36 = vld [vmem:[#allocation8 + $0x10] sm:$0xff] }
 0x8e3   :  { %v1658_v34 = vpop.f32.mrb[16].mxu1  ;;  %v1666_v37 = vsel %vm682_vm14, %v1664_v33, -inf }
 0x8e4   :  { %v1663_v38 = vmul.f32 0.125, %v1658_v34  ;;  %v4546_v35 = vpop.f32.mrb[17].mxu1  ;;  %1667 = vmax.xlane.f32.xlu1 %v1666_v37  ;;  %v2065_v37 = vld [vmem:[%s5937_s8] sm:$0xff] }
 0x8e5   :  { %v2067_v35 = vld [vmem:[%s5937_s8 + $0x10] sm:$0xff] }
 0x8e6   :  { %v1665_v39 = vsel %vm679_vm15, -1e+09, %v1663_v38  ;;  %v2066_v38 = vld [vmem:[%s5937_s8 + $0x8] sm:$0xff] }
 0x8e7   :  { %v1669_v41 = vsel %vm682_vm14, %v1665_v39, -inf }
 0x8e8   :  { %1670 = vmax.xlane.f32.xlu0 %v1669_v41  ;;  %v2068_v41 = vld [vmem:[%s5937_s8 + $0x18] sm:$0xff] }
 0x971   :  { %v1668_v42 = vpop.xlane.xlu1 %1667 }
 0x972   :  { %v1672_v43 = vsub.f32 %v1664_v33, %v1668_v42  ;;  %v1977_v33 = vld [vmem:[#allocation8 + $0x18] sm:$0xff]  ;;  %v4808_v42 = vpack.c.bf16 %v2068_v41, %v2067_v35 }
 0x973   :  { %v4800_v34 = vpack.c.bf16 %v1977_v33, %v1976_v36 }
 0x974   :  { %v1674_v44 = vmul.f32 1.442695, %v1672_v43  ;;  %v2069_v43 = vld [vmem:[%s5937_s8 + $0x20] sm:$0xff] }
 0x975   :  { %v1671_v45 = vpop.xlane.xlu0 %1670 }
 0x976   :  { %4943 = vpow2.f32 %v1674_v44  ;;  %v1673_v46 = vsub.f32 %v1665_v39, %v1671_v45  ;;  %v4804_v39 = vpack.c.bf16 %v2066_v38, %v2065_v37  ;;  %v2070_v44 = vld [vmem:[%s5937_s8 + $0x28] sm:$0xff] }
 0x977   :  { %v4812_v45 = vpack.c.bf16 %v2070_v44, %v2069_v43 }
 0x978   :  { %v1676_v48 = vmul.f32 1.442695, %v1673_v46 }
 0x97a   :  { %4945 = vpow2.f32 %v1676_v48 }
 0x980   :  { %v4944_v49 = vpop.eup %4943 }
 0x981   :  { %v1678_v51 = vsel %vm682_vm14, %v4944_v49, 0.0 }
 0x982   :  { %1679 = vadd.xlane.f32.xlu1 %v1678_v51 }
 0x984   :  { %v4946_v52 = vpop.eup %4945 }
 0x985   :  { %v1681_v53 = vsel %vm682_vm14, %v4946_v52, 0.0 }
 0x986   :  { %1682 = vadd.xlane.f32.xlu0 %v1681_v53 }
 0xa0f   :  { %v1680_v57 = vpop.xlane.xlu1 %1679 }
 0xa10   :  { %4947 = vrcp.f32 %v1680_v57 }
 0xa13   :  { %v1683_v58 = vpop.xlane.xlu0 %1682 }
 0xa14   :  { %4949 = vrcp.f32 %v1683_v58 }
 0xa1a   :  { %v4948_v59 = vpop.eup %4947 }
 0xa1b   :  { %v1685_v60 = vmul.f32 %v4948_v59, %v4944_v49 }
 0xa1d   :  { %4550 = vmatmul.mubr.msk.f32.vlgmr.msra.gmra.mrb[4].mxu0 %vm682_vm14, %v1685_v60 }
 0xa1e   :  { %v4950_v61 = vpop.eup %4949  ;;  %4791 = vmatpush3.bf16.msra.mxu0 %v4788_v56 }
 0xa1f   :  { %v1687_v62 = vmul.f32 %v4950_v61, %v4946_v52  ;;  %4793 = vmatprep.subr.bf16.mxu0 %v4792_v5 }
 0xa21   :  { %4555 = vmatmul.mubr.msk.f32.vlgmr.msra.gmra.mrb[12].mxu1 %vm682_vm14, %v1687_v62 }
 0xa22   :  { %4795 = vmatpush3.bf16.msra.mxu0 %v4792_v5  ;;  %v1970_v5 = vsub.s32 3, %v5323_v63 }
 0xa23   :  { %4805 = vmatprep.subr.bf16.mxu0 %v4804_v39 }
 0xaf0   :  { %v1757_v6 = vpop.f32.mrb[4].mxu0 }
 0xaf1   :  { %v4551_v7 = vpop.f32.mrb[5].mxu0  ;;  %4565 = vmatprep.mubr.msk.f32.mxu0 %vm200_vm3, %v1757_v6  ;;  %v1965_v6 = vrot.slane %v5328_v3, %v1964_v1 }
 0xaf4   :  { %v1830_v8 = vpop.f32.mrb[12].mxu1 }
 0xaf5   :  { %v4556_v9 = vpop.f32.mrb[13].mxu1  ;;  %4566 = vmatmul.mubr.msk.f32.vlgmr.msra.gmra.mrb[10].mxu0 %vm200_vm3, %v1830_v8 }
 0xaf6   :  { %4807 = vmatpush3.bf16.msra.mxu0 %v4804_v39 }
 0xaf7   :  { %4809 = vmatprep.subr.bf16.mxu0 %v4808_v42 }
 0xafa   :  { %4811 = vmatpush3.bf16.msra.mxu0 %v4808_v42 }
 0xafb   :  { %4813 = vmatprep.subr.bf16.mxu0 %v4812_v45 }
 0xafe   :  { %4815 = vmatpush3.bf16.msra.mxu0 %v4812_v45 }
 0xbc8   :  { %v4567_v10 = vpop.f32.mrb[10].mxu0 }
 0xbc9   :  { %v1919_v12 = vadd.f32 %v4567_v10, %v5347_v18  ;;  %v1913_v14 = vpop.f32.mrb[11].mxu0 }
 0xbca   :  { %v1914_v16 = vadd.f32 %v1913_v14, %v5337_v11  ;;  %v1974_v11 = vld [vmem:[#allocation8] sm:$0xff] }
 0xbcb   :  { %v1925_v17 = vsel %vm200_vm3, %v1919_v12, 0.0  ;;  %v4796_v26 = vpack.c.bf16 %v1975_v30, %v1974_v11  ;;  %v2075_v30 = vsub.s32 6, %v5323_v63 }
 0xbcc   :  { %1926 = vadd.xlane.f32.xlu0 %v1925_v17  ;;  %v1922_v19 = vsel %vm200_vm3, %v1914_v16, 0.0 }
 0xbcd   :  { %1923 = vadd.xlane.f32.xlu1 %v1922_v19  ;;  %4797 = vmatprep.subr.bf16.mxu1 %v4796_v26  ;;  %v2076_v36 = vrot.slane %v5328_v3, %v2075_v30 }
 0xbce   :  { %4799 = vmatpush3.bf16.msra.mxu1 %v4796_v26 }
 0xbcf   :  { %4801 = vmatprep.subr.bf16.mxu1 %v4800_v34 }
 0xbd2   :  { %4803 = vmatpush3.bf16.msra.mxu1 %v4800_v34 }
 0xc59   :  { %v1927_v20 = vpop.xlane.xlu0 %1926 }
 0xc5a   :  { %v1929_v21 = vmul.f32 0.03125, %v1927_v20  ;;  %v1924_v22 = vpop.xlane.xlu1 %1923  ;;  %v2071_v20 = vld [vmem:[%s5937_s8 + $0x30] sm:$0xff] }
 0xc5b   :  { %v1928_v24 = vmul.f32 0.03125, %v1924_v22 }
 0xc5c   :  { %v1931_v25 = vsub.f32 %v1919_v12, %v1929_v21  ;;  %v1971_v12 = vrot.slane %v5328_v3, %v1970_v5  ;;  %v2072_v21 = vld [vmem:[%s5937_s8 + $0x38] sm:$0xff] }
 0xc5d   :  { %v1930_v32 = vsub.f32 %v1914_v16, %v1928_v24  ;;  %v4816_v22 = vpack.c.bf16 %v2072_v21, %v2071_v20  ;;  %v5611_v24 = vld [vmem:[#allocation7] sm:$0x3] }
 0xc5e   :  { %v1933_v15 = vmul.f32 %v1931_v25, %v1931_v25 }
 0xc5f   :  { %v1932_v31 = vmul.f32 %v1930_v32, %v1930_v32  ;;  %4817 = vmatprep.subr.bf16.mxu0 %v4816_v22 }
 0xc60   :  { %v1937_v27 = vsel %vm200_vm3, %v1933_v15, 0.0  ;;  %4819 = vmatpush3.bf16.msra.mxu0 %v4816_v22 }
 0xc61   :  { %1938 = vadd.xlane.f32.xlu0 %v1937_v27  ;;  %v1934_v18 = vsel %vm200_vm3, %v1932_v31, 0.0 }
 0xc62   :  { %1935 = vadd.xlane.f32.xlu1 %v1934_v18 }
 0xcee   :  { %v1939_v46 = vpop.xlane.xlu0 %1938 }
 0xcef   :  { %v1941_v48 = vmul.f32 0.032258064, %v1939_v46  ;;  %v1936_v49 = vpop.xlane.xlu1 %1935 }
 0xcf0   :  { %v1940_v51 = vmul.f32 0.032258064, %v1936_v49 }
 0xcf1   :  { %4951 = vrsqrt.f32 %v1941_v48  ;;  %vm1951_vm7 = vcmp.eq.f32.partialorder %v1941_v48, inf  ;;  %v1954_v55 = vand.u32 2147483648, %v1941_v48  ;;  %vm1953_vm9 = vcmp.eq.f32.partialorder %v1941_v48, 0.0 }
 0xcf2   :  { %4953 = vrsqrt.f32 %v1940_v51  ;;  %vm1944_vm10 = vcmp.eq.f32.partialorder %v1940_v51, inf  ;;  %v1947_v58 = vand.u32 2147483648, %v1940_v51  ;;  %vm1946_vm11 = vcmp.eq.f32.partialorder %v1940_v51, 0.0 }
 0xcfb   :  { %v4952_v52 = vpop.eup %4951 }
 0xcfc   :  { %v4954_v53 = vpop.eup %4953  ;;  %v1950_v54 = vmul.f32 %v4952_v52, %v1941_v48 }
 0xcfd   :  { %v1943_v56 = vmul.f32 %v4954_v53, %v1940_v51 }
 0xcfe   :  { %v1952_v57 = vsel %vm1951_vm7, %v1941_v48, %v1950_v54  ;;  %v4214_v54 = vld [vmem:[%s5935_s6 + $0x80] sm:$0xff] }
 0xcff   :  { %v1955_v59 = vsel %vm1953_vm9, %v1954_v55, %v1952_v57  ;;  %v1945_v60 = vsel %vm1944_vm10, %v1940_v51, %v1943_v56  ;;  %v4215_v55 = vld [vmem:[%s5935_s6 + $0x88] sm:$0xff]  ;;  %v4226_v56 = vld [vmem:[%s5935_s6 + $0xc0] sm:$0xff] }
 0xd00   :  { %v1957_v61 = vadd.f32 1e-06, %v1955_v59  ;;  %v1948_v62 = vsel %vm1946_vm11, %v1947_v58, %v1945_v60  ;;  %v4820_v57 = vpack.c.bf16 %v4215_v55, %v4214_v54  ;;  %v4227_v58 = vld [vmem:[%s5935_s6 + $0xc8] sm:$0xff]  ;;  %v4216_v59 = vld [vmem:[%s5935_s6 + $0x90] sm:$0xff]  ;;  %v4217_v60 = vld [vmem:[%s5935_s6 + $0x98] sm:$0xff] }
 0xd01   :  { %v1956_v0 = vadd.f32 1e-06, %v1948_v62  ;;  %v4824_v62 = vpack.c.bf16 %v4217_v60, %v4216_v59 }
 0xd02   :  { %4955 = vrcp.f32 %v1957_v61  ;;  %v4836_v61 = vpack.c.bf16 %v4227_v58, %v4226_v56  ;;  %4821 = vmatprep.subr.bf16.mxu1 %v4820_v57 }
 0xd03   :  { %4957 = vrcp.f32 %v1956_v0  ;;  %v4228_v0 = vld [vmem:[%s5935_s6 + $0xd0] sm:$0xff] }
 0xd04   :  { %4837 = vmatprep.subr.bf16.mxu0 %v4836_v61 }
 0xd0c   :  { %v4956_v7 = vpop.eup %4955 }
 0xd0d   :  { %v4958_v8 = vpop.eup %4957  ;;  %v1961_v9 = vmul.f32 %v4956_v7, %v1931_v25  ;;  %v1981_v25 = vrot.slane %v5611_v24, %v5326_v2 }
 0xd0e   :  { %v1959_v10 = vmul.f32 %v4958_v8, %v1930_v32  ;;  %v4220_v8 = vld [vmem:[%s5935_s6 + $0xa0] sm:$0xff] }
 0xd0f   :  { %v1967_v14 = vmul.f32 %v1965_v6, %v1961_v9  ;;  %v4221_v9 = vld [vmem:[%s5935_s6 + $0xa8] sm:$0xff] }
 0xd10   :  { %v1966_v16 = vmul.f32 %v1965_v6, %v1959_v10  ;;  %v4229_v6 = vld [vmem:[%s5935_s6 + $0xd8] sm:$0xff]  ;;  %v4828_v10 = vpack.c.bf16 %v4221_v9, %v4220_v8 }
 0xd11   :  { %v1973_v19 = vadd.f32 %v1971_v12, %v1967_v14  ;;  %v4840_v7 = vpack.c.bf16 %v4229_v6, %v4228_v0 }
 0xd12   :  { %v1972_v17 = vadd.f32 %v1971_v12, %v1966_v16 }
 0xd14   :  { %4576 = vmatprep.mubr.msk.f32.mxu1 %vm200_vm3, %v1972_v17 }
 0xd15   :  { %4577 = vmatmul.mubr.msk.f32.vlgmr.msra.gmra.mrb[18].mxu1 %vm200_vm3, %v1973_v19 }
 0xd16   :  { %4823 = vmatpush3.bf16.msra.mxu1 %v4820_v57 }
 0xd17   :  { %4825 = vmatprep.subr.bf16.mxu1 %v4824_v62 }
 0xd1a   :  { %4827 = vmatpush3.bf16.msra.mxu1 %v4824_v62 }
 0xd1b   :  { %4829 = vmatprep.subr.bf16.mxu1 %v4828_v10 }
 0xde8   :  { %v4578_v32 = vpop.f32.mrb[18].mxu1 }
 0xde9   :  { %v2060_v15 = vadd.f32 %v4578_v32, %v1981_v25  ;;  %v2054_v31 = vpop.f32.mrb[19].mxu1 }
 0xdea   :  { %v2055_v27 = vadd.f32 %v2054_v31, %v1981_v25 }
 0xdeb   :  { %v2064_v11 = vmax.f32 %v2060_v15, 0.0 }
 0xdec   :  { %v2063_v18 = vmax.f32 %v2055_v27, 0.0 }
 0xdee   :  { %4595 = vmatprep.mubr.msk.f32.mxu0 %vm2077_vm12, %v2063_v18 }
 0xdef   :  { %4596 = vmatmul.mubr.msk.f32.vlgmr.msra.gmra.mrb[12].mxu0 %vm2077_vm12, %v2064_v11 }
 0xdf0   :  { %4839 = vmatpush3.bf16.msra.mxu0 %v4836_v61 }
 0xdf1   :  { %4841 = vmatprep.subr.bf16.mxu0 %v4840_v7 }
 0xdf4   :  { %4843 = vmatpush3.bf16.msra.mxu0 %v4840_v7 }
 0xdf5   :  { %4641 = vmatprep.subr.mxu0 %v5141_v13 }
 0xec2   :  { %v4597_v26 = vpop.f32.mrb[12].mxu0 }
 0xec3   :  { %v2156_v33 = vadd.f32 %v4597_v26, %v2076_v36  ;;  %v2150_v34 = vpop.f32.mrb[13].mxu0  ;;  %v2209_v26 = vsub.s32 5, %v5323_v63 }
 0xec4   :  { %v2151_v37 = vadd.f32 %v2150_v34, %v2076_v36  ;;  %v2203_v36 = vsub.s32 4, %v5323_v63 }
 0xec5   :  { %v2160_v38 = vadd.f32 %v2156_v33, %v1973_v19 }
 0xec6   :  { %v2159_v35 = vadd.f32 %v2151_v37, %v1972_v17  ;;  %v2204_v33 = vrot.slane %v5328_v3, %v2203_v36 }
 0xec7   :  { %v2164_v39 = vsel %vm200_vm3, %v2160_v38, 0.0 }
 0xec8   :  { %2165 = vadd.xlane.f32.xlu0 %v2164_v39  ;;  %v2161_v41 = vsel %vm200_vm3, %v2159_v35, 0.0  ;;  %v2210_v39 = vrot.slane %v5328_v3, %v2209_v26 }
 0xec9   :  { %2162 = vadd.xlane.f32.xlu1 %v2161_v41 }
 0xf55   :  { %v2166_v42 = vpop.xlane.xlu0 %2165 }
 0xf56   :  { %v2168_v43 = vmul.f32 0.03125, %v2166_v42  ;;  %v2163_v44 = vpop.xlane.xlu1 %2162 }
 0xf57   :  { %v2167_v45 = vmul.f32 0.03125, %v2163_v44  ;;  %v4223_v44 = vld [vmem:[%s5935_s6 + $0xb8] sm:$0xff] }
 0xf58   :  { %v2170_v46 = vsub.f32 %v2160_v38, %v2168_v43  ;;  %v4222_v43 = vld [vmem:[%s5935_s6 + $0xb0] sm:$0xff] }
 0xf59   :  { %v2169_v48 = vsub.f32 %v2159_v35, %v2167_v45 }
 0xf5a   :  { %v2172_v49 = vmul.f32 %v2170_v46, %v2170_v46 }
 0xf5b   :  { %v2171_v51 = vmul.f32 %v2169_v48, %v2169_v48 }
 0xf5c   :  { %v2176_v52 = vsel %vm200_vm3, %v2172_v49, 0.0 }
 0xf5d   :  { %2177 = vadd.xlane.f32.xlu0 %v2176_v52  ;;  %v2173_v53 = vsel %vm200_vm3, %v2171_v51, 0.0  ;;  %v4832_v51 = vpack.c.bf16 %v4223_v44, %v4222_v43 }
 0xf5e   :  { %2174 = vadd.xlane.f32.xlu1 %v2173_v53 }
 0xfea   :  { %v2178_v12 = vpop.xlane.xlu0 %2177 }
 0xfeb   :  { %v2180_v14 = vmul.f32 0.032258064, %v2178_v12  ;;  %v2175_v16 = vpop.xlane.xlu1 %2174 }
 0xfec   :  { %v2179_v17 = vmul.f32 0.032258064, %v2175_v16 }
 0xfed   :  { %4959 = vrsqrt.f32 %v2180_v14  ;;  %vm2190_vm0 = vcmp.eq.f32.partialorder %v2180_v14, inf  ;;  %v2193_v22 = vand.u32 2147483648, %v2180_v14  ;;  %vm2192_vm1 = vcmp.eq.f32.partialorder %v2180_v14, 0.0 }
 0xfee   :  { %4961 = vrsqrt.f32 %v2179_v17  ;;  %vm2183_vm2 = vcmp.eq.f32.partialorder %v2179_v17, inf  ;;  %v2186_v15 = vand.u32 2147483648, %v2179_v17  ;;  %vm2185_vm4 = vcmp.eq.f32.partialorder %v2179_v17, 0.0 }
 0xff7   :  { %v4960_v19 = vpop.eup %4959 }
 0xff8   :  { %v4962_v20 = vpop.eup %4961  ;;  %v2189_v21 = vmul.f32 %v4960_v19, %v2180_v14 }
 0xff9   :  { %v2182_v25 = vmul.f32 %v4962_v20, %v2179_v17 }
 0xffa   :  { %v2191_v32 = vsel %vm2190_vm0, %v2180_v14, %v2189_v21 }
 0xffb   :  { %v2194_v31 = vsel %vm2192_vm1, %v2193_v22, %v2191_v32  ;;  %v2184_v27 = vsel %vm2183_vm2, %v2179_v17, %v2182_v25 }
 0xffc   :  { %v2196_v18 = vadd.f32 1e-06, %v2194_v31  ;;  %v2187_v11 = vsel %vm2185_vm4, %v2186_v15, %v2184_v27 }
 0xffd   :  { %v2195_v30 = vadd.f32 1e-06, %v2187_v11 }
 0xffe   :  { %4963 = vrcp.f32 %v2196_v18 }
 0xfff   :  { %4965 = vrcp.f32 %v2195_v30 }
0x1008   :  { %v4964_v34 = vpop.eup %4963 }
0x1009   :  { %v4966_v37 = vpop.eup %4965  ;;  %v2200_v38 = vmul.f32 %v4964_v34, %v2170_v46 }
0x100a   :  { %v2198_v35 = vmul.f32 %v4966_v37, %v2169_v48 }
0x100b   :  { %v2206_v41 = vmul.f32 %v2204_v33, %v2200_v38 }
0x100c   :  { %v2205_v42 = vmul.f32 %v2204_v33, %v2198_v35 }
0x100d   :  { %v5666_v49 = vadd.f32 %v2210_v39, %v2206_v41 }
0x100e   :  { %v5664_v45 = vadd.f32 %v2210_v39, %v2205_v42 }
0x1010   :  { %4606 = vmatprep.mubr.msk.f32.mxu1 %vm200_vm3, %v5664_v45  ;;  %4628 = vmatprep.mubr.msk.f32.mxu0 %vm200_vm3, %v5664_v45 }
0x1011   :  { %4607 = vmatmul.mubr.msk.f32.vlgmr.msra.gmra.mrb[20].mxu1 %vm200_vm3, %v5666_v49  ;;  %4629 = vmatmul.mubr.msk.f32.vlgmr.msra.gmra.mrb[14].mxu0 %vm200_vm3, %v5666_v49 }
0x1012   :  { %4831 = vmatpush3.bf16.msra.mxu1 %v4828_v10  ;;  %4617 = vmatprep.mubr.msk.f32.mxu1 %vm200_vm3, %v5664_v45 }
0x1013   :  { %4833 = vmatprep.subr.bf16.mxu1 %v4832_v51  ;;  %4643 = vmatprep.mubr.msk.f32.mxu0 %vm5142_vm8, %v5141_v13 }
0x1016   :  { %4835 = vmatpush3.bf16.msra.mxu1 %v4832_v51 }
0x1017   :  { %4631 = vmatprep.subr.mxu1 %v5141_v13 }
0x1019   :  { %4618 = vmatmul.mubr.msk.f32.vlgmr.msra.gmra.mrb[22].mxu1 %vm200_vm3, %v5666_v49 }
0x101a   :  { %4633 = vmatprep.mubr.msk.f32.mxu1 %vm5142_vm8, %v5141_v13 }
0x10e4   :  { %v5685_v3 = vpop.f32.mrb[20].mxu1  ;;  %v5687_v46 = vpop.f32.mrb[14].mxu0 }
0x10e5   :  { %v5689_v48 = vpop.f32.mrb[21].mxu1  ;;  %v5691_v52 = vpop.f32.mrb[15].mxu0  ;;  %v2460_v58 = vmul.f32 %v5685_v3, %v5384_v28  ;;  %v2642_v59 = vmul.f32 %v5685_v3, %v5387_v29  ;;  %v2644_v60 = vmul.f32 %v5687_v46, %v5387_v29 }
0x10e6   :  { %v2459_v55 = vmul.f32 %v5384_v28, %v5689_v48  ;;  %v2641_v56 = vmul.f32 %v5387_v29, %v5689_v48  ;;  %v2643_v57 = vmul.f32 %v5387_v29, %v5691_v52 }
0x10ec   :  { %v5693_v53 = vpop.f32.mrb[22].mxu1 }
0x10ed   :  { %v5695_v54 = vpop.f32.mrb[23].mxu1 }
0x10ee   :  { %4632 = vmatpush3.xpose.msk.msra.mxu1 %vm200_vm3, %v5695_v54  ;;  %4642 = vmatpush3.xpose.msk.msra.mxu0 %vm200_vm3, %v5695_v54 }
0x10ef   :  { %4636 = vmatprep.subr.mxu1 %v5141_v13  ;;  %4651 = vmatprep.subr.mxu0 %v5141_v13 }
0x10f1   :  { %4634 = vmatmul.mubr.msk.f32.vlgmr.msra.gmra.mrb[24].mxu1 %vm200_vm3, %v2459_v55  ;;  %4644 = vmatmul.mubr.msk.f32.vlgmr.msra.gmra.mrb[16].mxu0 %vm200_vm3, %v2641_v56 }
0x10f2   :  { %4637 = vmatpush3.xpose.msk.msra.mxu1 %vm200_vm3, %v5693_v53  ;;  %4652 = vmatpush3.msra.mxu0 %v2643_v57 }
0x10f3   :  { %4638 = vmatprep.mubr.msk.f32.mxu1 %vm5142_vm8, %v5141_v13  ;;  %4646 = vmatprep.subr.mxu1 %v5141_v13 }
0x10f4   :  { %4653 = vmatprep.mubr.msk.f32.mxu0 %vm5142_vm8, %v5141_v13  ;;  %4661 = vmatprep.subr.mxu0 %v5141_v13 }
0x10f5   :  { %4639 = vmatmul.mubr.msk.f32.vlgmr.msra.gmra.mrb[26].mxu1 %vm200_vm3, %v2460_v58 }
0x10f6   :  { %4647 = vmatpush3.xpose.msk.msra.mxu1 %vm200_vm3, %v5693_v53  ;;  %4648 = vmatprep.mubr.msk.f32.mxu1 %vm5142_vm8, %v5141_v13 }
0x10f7   :  { %4656 = vmatprep.subr.mxu1 %v5141_v13 }
0x10f9   :  { %4649 = vmatmul.mubr.msk.f32.vlgmr.msra.gmra.mrb[28].mxu1 %vm200_vm3, %v2642_v59 }
0x10fa   :  { %4657 = vmatpush3.msra.mxu1 %v2644_v60  ;;  %4658 = vmatprep.mubr.msk.f32.mxu1 %vm5142_vm8, %v5141_v13 }
0x10fb   :  { %4666 = vmatprep.subr.mxu1 %v5141_v13 }
0x11c4   :  { %v2535_v61 = vpop.f32.mrb[24].mxu1  ;;  %v2714_v62 = vpop.f32.mrb[16].mxu0 }
0x11c5   :  { %v2615_v0 = vmul.f32 0.125, %v2535_v61  ;;  %v2791_v6 = vmul.f32 0.125, %v2714_v62  ;;  %v4635_v7 = vpop.f32.mrb[25].mxu1  ;;  %v4645_v8 = vpop.f32.mrb[17].mxu0 }
0x11c7   :  { %v2793_v9 = vsel %vm678_vm13, -1e+09, %v2791_v6  ;;  %v2617_v14 = vsel %vm678_vm13, -1e+09, %v2615_v0  ;;  %v2461_v0 = vmul.f32 %v5384_v28, %v5691_v52 }
0x11c8   :  { %v2611_v10 = vpop.f32.mrb[26].mxu1  ;;  %v2795_v29 = vsel %vm682_vm14, %v2793_v9, -inf  ;;  %v2619_v17 = vsel %vm682_vm14, %v2617_v14, -inf }
0x11c9   :  { %2796 = vmax.xlane.f32.xlu1 %v2795_v29  ;;  %v4640_v12 = vpop.f32.mrb[27].mxu1  ;;  %v2616_v19 = vmul.f32 0.125, %v2611_v10  ;;  %v2462_v10 = vmul.f32 %v5687_v46, %v5384_v28  ;;  %v3109_v29 = vmul.f32 %v5478_v47, %v5689_v48  ;;  %v3111_v28 = vmul.f32 %v5478_v47, %v5691_v52 }
0x11cb   :  { %v2618_v32 = vsel %vm679_vm15, -1e+09, %v2616_v19 }
0x11cc   :  { %v2787_v16 = vpop.f32.mrb[28].mxu1  ;;  %v2622_v15 = vsel %vm682_vm14, %v2618_v32, -inf }
0x11cd   :  { %v2792_v20 = vmul.f32 0.125, %v2787_v16  ;;  %2620 = vmax.xlane.f32.xlu1 %v2619_v17  ;;  %v4650_v21 = vpop.f32.mrb[29].mxu1  ;;  %v3110_v16 = vmul.f32 %v5685_v3, %v5478_v47  ;;  %v3112_v17 = vmul.f32 %v5687_v46, %v5478_v47 }
0x11cf   :  { %v2794_v22 = vsel %vm679_vm15, -1e+09, %v2792_v20 }
0x11d0   :  { %v2798_v25 = vsel %vm682_vm14, %v2794_v22, -inf }
0x11d1   :  { %2799 = vmax.xlane.f32.xlu0 %v2798_v25 }
0x11d5   :  { %2623 = vmax.xlane.f32.xlu0 %v2622_v15 }
0x1256   :  { %v2797_v31 = vpop.xlane.xlu1 %2796 }
0x1257   :  { %v2801_v27 = vsub.f32 %v2793_v9, %v2797_v31 }
0x1259   :  { %v2803_v18 = vmul.f32 1.442695, %v2801_v27 }
0x125a   :  { %v2621_v11 = vpop.xlane.xlu1 %2620 }
0x125b   :  { %4967 = vpow2.f32 %v2803_v18  ;;  %v2625_v30 = vsub.f32 %v2617_v14, %v2621_v11 }
0x125d   :  { %v2627_v36 = vmul.f32 1.442695, %v2625_v30 }
0x125e   :  { %v2800_v26 = vpop.xlane.xlu0 %2799 }
0x125f   :  { %4969 = vpow2.f32 %v2627_v36  ;;  %v2802_v33 = vsub.f32 %v2794_v22, %v2800_v26 }
0x1261   :  { %v2805_v34 = vmul.f32 1.442695, %v2802_v33 }
0x1262   :  { %v2624_v37 = vpop.xlane.xlu0 %2623 }
0x1263   :  { %4971 = vpow2.f32 %v2805_v34  ;;  %v2626_v38 = vsub.f32 %v2618_v32, %v2624_v37 }
0x1265   :  { %v4968_v35 = vpop.eup %4967  ;;  %v2629_v39 = vmul.f32 1.442695, %v2626_v38 }
0x1266   :  { %v2807_v41 = vsel %vm682_vm14, %v4968_v35, 0.0 }
0x1267   :  { %4973 = vpow2.f32 %v2629_v39  ;;  %2808 = vadd.xlane.f32.xlu1 %v2807_v41 }
0x1269   :  { %v4970_v42 = vpop.eup %4969 }
0x126a   :  { %v2631_v43 = vsel %vm682_vm14, %v4970_v42, 0.0 }
0x126b   :  { %2632 = vadd.xlane.f32.xlu1 %v2631_v43 }
0x126d   :  { %v4972_v44 = vpop.eup %4971 }
0x126e   :  { %v2810_v51 = vsel %vm682_vm14, %v4972_v44, 0.0 }
0x126f   :  { %2811 = vadd.xlane.f32.xlu0 %v2810_v51  ;;  %v3435_v51 = vmul.f32 %v5519_v23, %v5691_v52  ;;  %v3436_v52 = vmul.f32 %v5687_v46, %v5519_v23 }
0x1271   :  { %v4974_v55 = vpop.eup %4973 }
0x1272   :  { %v2634_v56 = vsel %vm682_vm14, %v4974_v55, 0.0 }
0x1273   :  { %2635 = vadd.xlane.f32.xlu0 %v2634_v56 }
0x12f4   :  { %v2809_v57 = vpop.xlane.xlu1 %2808 }
0x12f5   :  { %4975 = vrcp.f32 %v2809_v57 }
0x12f8   :  { %v2633_v58 = vpop.xlane.xlu1 %2632 }
0x12f9   :  { %4977 = vrcp.f32 %v2633_v58 }
0x12fc   :  { %v2812_v59 = vpop.xlane.xlu0 %2811 }
0x12fd   :  { %4979 = vrcp.f32 %v2812_v59 }
0x12ff   :  { %v4976_v60 = vpop.eup %4975 }
0x1300   :  { %v2814_v61 = vmul.f32 %v4976_v60, %v4968_v35  ;;  %v2636_v62 = vpop.xlane.xlu0 %2635 }
0x1301   :  { %4981 = vrcp.f32 %v2636_v62 }
0x1302   :  { %4654 = vmatmul.mubr.msk.f32.vlgmr.msra.gmra.mrb[18].mxu0 %vm682_vm14, %v2814_v61 }
0x1303   :  { %4662 = vmatpush3.msra.mxu0 %v2461_v0  ;;  %4663 = vmatprep.mubr.msk.f32.mxu0 %vm5142_vm8, %v5141_v13  ;;  %v4978_v6 = vpop.eup %4977 }
0x1304   :  { %4671 = vmatprep.subr.mxu0 %v5141_v13  ;;  %v2638_v8 = vmul.f32 %v4978_v6, %v4970_v42 }
0x1307   :  { %v4980_v7 = vpop.eup %4979 }
0x1308   :  { %v2816_v9 = vmul.f32 %v4980_v7, %v4972_v44  ;;  %v3433_v44 = vmul.f32 %v5519_v23, %v5689_v48  ;;  %v3434_v48 = vmul.f32 %v5685_v3, %v5519_v23 }
0x130a   :  { %4659 = vmatmul.mubr.msk.f32.vlgmr.msra.gmra.mrb[30].mxu1 %vm682_vm14, %v2816_v9  ;;  %4664 = vmatmul.mubr.msk.f32.vlgmr.msra.gmra.mrb[18].mxu0 %vm682_vm14, %v2638_v8 }
0x130b   :  { %4667 = vmatpush3.msra.mxu1 %v2462_v10  ;;  %4672 = vmatpush3.xpose.msk.msra.mxu0 %vm200_vm3, %v5695_v54  ;;  %v4982_v12 = vpop.eup %4981 }
0x130c   :  { %4673 = vmatprep.mubr.msk.f32.mxu0 %vm5142_vm8, %v5141_v13  ;;  %4681 = vmatprep.subr.mxu0 %v5141_v13  ;;  %v2640_v14 = vmul.f32 %v4982_v12, %v4974_v55 }
0x130d   :  { %4668 = vmatprep.mubr.msk.f32.mxu1 %vm5142_vm8, %v5141_v13  ;;  %4676 = vmatprep.subr.mxu1 %v5141_v13 }
0x130e   :  { %4674 = vmatmul.mubr.msk.f32.vlgmr.msra.gmra.mrb[20].mxu0 %vm200_vm3, %v3109_v29 }
0x130f   :  { %4682 = vmatpush3.msra.mxu0 %v3111_v28  ;;  %4683 = vmatprep.mubr.msk.f32.mxu0 %vm5142_vm8, %v5141_v13 }
0x1310   :  { %4691 = vmatprep.subr.mxu0 %v5141_v13 }
0x1312   :  { %4669 = vmatmul.mubr.msk.f32.vlgmr.msra.gmra.mrb[30].mxu1 %vm682_vm14, %v2640_v14 }
0x1313   :  { %4677 = vmatpush3.xpose.msk.msra.mxu1 %vm200_vm3, %v5693_v53  ;;  %4678 = vmatprep.mubr.msk.f32.mxu1 %vm5142_vm8, %v5141_v13 }
0x1314   :  { %4686 = vmatprep.subr.mxu1 %v5141_v13 }
0x1316   :  { %4679 = vmatmul.mubr.msk.f32.vlgmr.msra.gmra.mrb[32].mxu1 %vm200_vm3, %v3110_v16 }
0x1317   :  { %4687 = vmatpush3.msra.mxu1 %v3112_v17  ;;  %4688 = vmatprep.mubr.msk.f32.mxu1 %vm5142_vm8, %v5141_v13 }
0x1318   :  { %4696 = vmatprep.subr.mxu1 %v5141_v13 }
0x13e1   :  { %v3182_v19 = vpop.f32.mrb[20].mxu0 }
0x13e2   :  { %v3259_v20 = vmul.f32 0.125, %v3182_v19  ;;  %v4675_v21 = vpop.f32.mrb[21].mxu0  ;;  %v4256_v19 = vld [vmem:[%s5935_s6 + $0xe0] sm:$0xff] }
0x13e4   :  { %v3261_v22 = vsel %vm678_vm13, -1e+09, %v3259_v20  ;;  %v4257_v20 = vld [vmem:[%s5935_s6 + $0xe8] sm:$0xff] }
0x13e5   :  { %v3263_v25 = vsel %vm682_vm14, %v3261_v22, -inf  ;;  %v4844_v21 = vpack.c.bf16 %v4257_v20, %v4256_v19  ;;  %v5882_v19 = vld [vmem:[#allocation5 + $0x8] sm:$0xf]  ;;  %v5015_v20 = vld [vmem:[#allocation5] sm:$0xff] }
0x13e6   :  { %3264 = vmax.xlane.f32.xlu1 %v3263_v25  ;;  %v4259_v25 = vld [vmem:[%s5935_s6 + $0xf8] sm:$0xff] }
0x13e9   :  { %v3255_v32 = vpop.f32.mrb[32].mxu1 }
0x13ea   :  { %v3260_v15 = vmul.f32 0.125, %v3255_v32  ;;  %v4680_v47 = vpop.f32.mrb[33].mxu1 }
0x13ec   :  { %v3262_v31 = vsel %vm679_vm15, -1e+09, %v3260_v15 }
0x13ed   :  { %v3266_v27 = vsel %vm682_vm14, %v3262_v31, -inf }
0x13ee   :  { %3267 = vmax.xlane.f32.xlu0 %v3266_v27 }
0x1473   :  { %v3265_v18 = vpop.xlane.xlu1 %3264 }
0x1474   :  { %v3269_v11 = vsub.f32 %v3261_v22, %v3265_v18  ;;  %v4258_v22 = vld [vmem:[%s5935_s6 + $0xf0] sm:$0xff] }
0x1475   :  { %v4848_v32 = vpack.c.bf16 %v4259_v25, %v4258_v22 }
0x1476   :  { %v3271_v30 = vmul.f32 1.442695, %v3269_v11 }
0x1478   :  { %4983 = vpow2.f32 %v3271_v30 }
0x147b   :  { %v3268_v36 = vpop.xlane.xlu0 %3267 }
0x147c   :  { %v3270_v26 = vsub.f32 %v3262_v31, %v3268_v36 }
0x147e   :  { %v3273_v33 = vmul.f32 1.442695, %v3270_v26 }
0x1480   :  { %4985 = vpow2.f32 %v3273_v33 }
0x1482   :  { %v4984_v34 = vpop.eup %4983 }
0x1483   :  { %v3275_v37 = vsel %vm682_vm14, %v4984_v34, 0.0 }
0x1484   :  { %3276 = vadd.xlane.f32.xlu1 %v3275_v37 }
0x148a   :  { %v4986_v38 = vpop.eup %4985 }
0x148b   :  { %v3278_v35 = vsel %vm682_vm14, %v4986_v38, 0.0 }
0x148c   :  { %3279 = vadd.xlane.f32.xlu0 %v3278_v35 }
0x1511   :  { %v3277_v39 = vpop.xlane.xlu1 %3276 }
0x1512   :  { %4987 = vrcp.f32 %v3277_v39 }
0x1519   :  { %v3280_v41 = vpop.xlane.xlu0 %3279 }
0x151a   :  { %4989 = vrcp.f32 %v3280_v41 }
0x151c   :  { %v4988_v42 = vpop.eup %4987 }
0x151d   :  { %v3282_v43 = vmul.f32 %v4988_v42, %v4984_v34 }
0x151f   :  { %4684 = vmatmul.mubr.msk.f32.vlgmr.msra.gmra.mrb[18].mxu0 %vm682_vm14, %v3282_v43 }
0x1520   :  { %4692 = vmatpush3.xpose.msk.msra.mxu0 %vm200_vm3, %v5695_v54  ;;  %4693 = vmatprep.mubr.msk.f32.mxu0 %vm5142_vm8, %v5141_v13 }
0x1521   :  { %4701 = vmatprep.subr.mxu0 %v5141_v13 }
0x1523   :  { %4694 = vmatmul.mubr.msk.f32.vlgmr.msra.gmra.mrb[22].mxu0 %vm200_vm3, %v3433_v44  ;;  %v3896_v44 = vld [vmem:[#allocation8 + $0x20] sm:$0xff] }
0x1524   :  { %v4990_v55 = vpop.eup %4989  ;;  %4702 = vmatpush3.msra.mxu0 %v3435_v51  ;;  %4703 = vmatprep.mubr.msk.f32.mxu0 %vm5142_vm8, %v5141_v13  ;;  %v3897_v51 = vld [vmem:[#allocation8 + $0x28] sm:$0xff] }
0x1525   :  { %v3284_v56 = vmul.f32 %v4990_v55, %v4986_v38  ;;  %4845 = vmatprep.subr.bf16.mxu0 %v4844_v21  ;;  %v3898_v55 = vld [vmem:[#allocation8 + $0x30] sm:$0xff] }
0x1527   :  { %4689 = vmatmul.mubr.msk.f32.vlgmr.msra.gmra.mrb[30].mxu1 %vm682_vm14, %v3284_v56  ;;  %v4852_v56 = vpack.c.bf16 %v3897_v51, %v3896_v44 }
0x1528   :  { %4697 = vmatpush3.xpose.msk.msra.mxu1 %vm200_vm3, %v5693_v53  ;;  %4698 = vmatprep.mubr.msk.f32.mxu1 %vm5142_vm8, %v5141_v13 }
0x1529   :  { %4706 = vmatprep.subr.mxu1 %v5141_v13 }
0x152b   :  { %4699 = vmatmul.mubr.msk.f32.vlgmr.msra.gmra.mrb[34].mxu1 %vm200_vm3, %v3434_v48  ;;  %v3899_v48 = vld [vmem:[#allocation8 + $0x38] sm:$0xff] }
0x152c   :  { %4707 = vmatpush3.msra.mxu1 %v3436_v52  ;;  %4708 = vmatprep.mubr.msk.f32.mxu1 %vm5142_vm8, %v5141_v13  ;;  %v4856_v52 = vpack.c.bf16 %v3899_v48, %v3898_v55 }
0x152d   :  { %4853 = vmatprep.subr.bf16.mxu1 %v4852_v56 }
0x15f6   :  { %v3506_v54 = vpop.f32.mrb[22].mxu0 }
0x15f7   :  { %v3583_v57 = vmul.f32 0.125, %v3506_v54  ;;  %v4695_v53 = vpop.f32.mrb[23].mxu0  ;;  %v4264_v54 = vld [vmem:[%s5937_s8 + $0x40] sm:$0xff] }
0x15f8   :  { %v4266_v53 = vld [vmem:[%s5937_s8 + $0x50] sm:$0xff] }
0x15f9   :  { %v3585_v58 = vsel %vm678_vm13, -1e+09, %v3583_v57  ;;  %v4265_v57 = vld [vmem:[%s5937_s8 + $0x48] sm:$0xff] }
0x15fa   :  { %v3587_v59 = vsel %vm682_vm14, %v3585_v58, -inf }
0x15fb   :  { %3588 = vmax.xlane.f32.xlu1 %v3587_v59  ;;  %v4267_v59 = vld [vmem:[%s5937_s8 + $0x58] sm:$0xff] }
0x15fe   :  { %v3579_v3 = vpop.f32.mrb[34].mxu1 }
0x15ff   :  { %v3584_v60 = vmul.f32 0.125, %v3579_v3  ;;  %v4700_v61 = vpop.f32.mrb[35].mxu1  ;;  %v4864_v3 = vpack.c.bf16 %v4267_v59, %v4266_v53 }
0x1600   :  { %v4269_v61 = vld [vmem:[%s5937_s8 + $0x68] sm:$0xff] }
0x1601   :  { %v3586_v23 = vsel %vm679_vm15, -1e+09, %v3584_v60  ;;  %v4268_v60 = vld [vmem:[%s5937_s8 + $0x60] sm:$0xff] }
0x1602   :  { %v3590_v46 = vsel %vm682_vm14, %v3586_v23, -inf }
0x1603   :  { %3591 = vmax.xlane.f32.xlu0 %v3590_v46 }
0x1688   :  { %v3589_v62 = vpop.xlane.xlu1 %3588 }
0x1689   :  { %v3593_v13 = vsub.f32 %v3585_v58, %v3589_v62  ;;  %v4860_v58 = vpack.c.bf16 %v4265_v57, %v4264_v54 }
0x168b   :  { %v3595_v0 = vmul.f32 1.442695, %v3593_v13 }
0x168d   :  { %4991 = vpow2.f32 %v3595_v0 }
0x1690   :  { %v3592_v6 = vpop.xlane.xlu0 %3591 }
0x1691   :  { %v3594_v7 = vsub.f32 %v3586_v23, %v3592_v6  ;;  %v4868_v23 = vpack.c.bf16 %v4269_v61, %v4268_v60 }
0x1693   :  { %v3597_v40 = vmul.f32 1.442695, %v3594_v7 }
0x1695   :  { %4993 = vpow2.f32 %v3597_v40 }
0x1697   :  { %v4992_v8 = vpop.eup %4991 }
0x1698   :  { %v3599_v9 = vsel %vm682_vm14, %v4992_v8, 0.0 }
0x1699   :  { %3600 = vadd.xlane.f32.xlu1 %v3599_v9 }
0x169f   :  { %v4994_v10 = vpop.eup %4993 }
0x16a0   :  { %v3602_v29 = vsel %vm682_vm14, %v4994_v10, 0.0 }
0x16a1   :  { %3603 = vadd.xlane.f32.xlu0 %v3602_v29 }
0x1726   :  { %v3601_v50 = vpop.xlane.xlu1 %3600 }
0x1727   :  { %4995 = vrcp.f32 %v3601_v50 }
0x172e   :  { %v3604_v12 = vpop.xlane.xlu0 %3603 }
0x172f   :  { %4997 = vrcp.f32 %v3604_v12 }
0x1731   :  { %v4996_v28 = vpop.eup %4995 }
0x1732   :  { %v3606_v14 = vmul.f32 %v4996_v28, %v4992_v8 }
0x1734   :  { %4704 = vmatmul.mubr.msk.f32.vlgmr.msra.gmra.mrb[18].mxu0 %vm682_vm14, %v3606_v14 }
0x1735   :  { %4847 = vmatpush3.bf16.msra.mxu0 %v4844_v21 }
0x1736   :  { %4849 = vmatprep.subr.bf16.mxu0 %v4848_v32 }
0x1739   :  { %v4998_v16 = vpop.eup %4997  ;;  %4851 = vmatpush3.bf16.msra.mxu0 %v4848_v32 }
0x173a   :  { %v3608_v17 = vmul.f32 %v4998_v16, %v4994_v10  ;;  %4861 = vmatprep.subr.bf16.mxu0 %v4860_v58 }
0x173c   :  { %4709 = vmatmul.mubr.msk.f32.vlgmr.msra.gmra.mrb[30].mxu1 %vm682_vm14, %v3608_v17  ;;  %v3885_v17 = vsub.s32 7, %v5323_v63 }
0x173d   :  { %4855 = vmatpush3.bf16.msra.mxu1 %v4852_v56 }
0x173e   :  { %4857 = vmatprep.subr.bf16.mxu1 %v4856_v52  ;;  %v3886_v21 = vrot.slane %v5015_v20, %v3885_v17  ;;  %v4132_v20 = vrot.slane %v5882_v19, %v1964_v1 }
0x1741   :  { %4859 = vmatpush3.bf16.msra.mxu1 %v4856_v52 }
0x1807   :  { %v3678_v15 = vpop.f32.mrb[18].mxu0 }
0x1808   :  { %v4705_v47 = vpop.f32.mrb[19].mxu0  ;;  %4719 = vmatprep.mubr.msk.f32.mxu0 %vm200_vm3, %v3678_v15 }
0x1809   :  { %v3892_v47 = vrot.slane %v5882_v19, %v5326_v2  ;;  %v3903_v2 = vrot.slane %v5611_v24, %v5331_v4 }
0x180f   :  { %v3751_v31 = vpop.f32.mrb[30].mxu1 }
0x1810   :  { %v4710_v27 = vpop.f32.mrb[31].mxu1  ;;  %4720 = vmatmul.mubr.msk.f32.vlgmr.msra.gmra.mrb[24].mxu0 %vm200_vm3, %v3751_v31 }
0x1811   :  { %4863 = vmatpush3.bf16.msra.mxu0 %v4860_v58 }
0x1812   :  { %4865 = vmatprep.subr.bf16.mxu0 %v4864_v3 }
0x1815   :  { %4867 = vmatpush3.bf16.msra.mxu0 %v4864_v3 }
0x1816   :  { %4869 = vmatprep.subr.bf16.mxu0 %v4868_v23 }
0x1819   :  { %4871 = vmatpush3.bf16.msra.mxu0 %v4868_v23 }
0x18e3   :  { %v4721_v18 = vpop.f32.mrb[24].mxu0 }
0x18e4   :  { %v3840_v11 = vadd.f32 %v4721_v18, %v5666_v49  ;;  %v3834_v30 = vpop.f32.mrb[25].mxu0 }
0x18e5   :  { %v3835_v36 = vadd.f32 %v3834_v30, %v5664_v45  ;;  %v4270_v30 = vld [vmem:[%s5937_s8 + $0x70] sm:$0xff] }
0x18e6   :  { %v3846_v26 = vsel %vm200_vm3, %v3840_v11, 0.0 }
0x18e7   :  { %3847 = vadd.xlane.f32.xlu0 %v3846_v26  ;;  %v3843_v33 = vsel %vm200_vm3, %v3835_v36, 0.0 }
0x18e8   :  { %3844 = vadd.xlane.f32.xlu1 %v3843_v33 }
0x1974   :  { %v3848_v34 = vpop.xlane.xlu0 %3847 }
0x1975   :  { %v3850_v37 = vmul.f32 0.03125, %v3848_v34  ;;  %v3845_v38 = vpop.xlane.xlu1 %3844 }
0x1976   :  { %v3849_v35 = vmul.f32 0.03125, %v3845_v38 }
0x1977   :  { %v5853_v39 = vsub.f32 %v3840_v11, %v3850_v37 }
0x1978   :  { %v5855_v41 = vsub.f32 %v3835_v36, %v3849_v35  ;;  %v4271_v36 = vld [vmem:[%s5937_s8 + $0x78] sm:$0xff]  ;;  %s5143_s8 = smov [#allocation10]  }
0x1979   :  { %v3854_v49 = vmul.f32 %v5853_v39, %v5853_v39  ;;  %v4872_v26 = vpack.c.bf16 %v4271_v36, %v4270_v30  ;;  %s4142_s29 = sshll.u32 %s5143_s8, 4  ;;  %s4143_s29 = int_to_ptr.vmem [resolvable:$true] %s4142_s29 }
0x197a   :  { %v3853_v45 = vmul.f32 %v5855_v41, %v5855_v41  ;;  %s5104_s30 = scalar_lea.vmem %s4143_s29, 256  ;;  %p5109_p5 = scmp.lt.s32.totalorder %s4143_s29, %s4143_s29 }
0x197b   :  { %v3858_v42 = vsel %vm200_vm3, %v3854_v49, 0.0  ;;  %4873 = vmatprep.subr.bf16.mxu0 %v4872_v26  ;;  %p5105_p4 = scmp.ne.s32.totalorder %s4143_s29, %s5104_s30  ;;  %p5110_p6 = scmp.lt.s32.totalorder %s5104_s30, %s5104_s30 }
0x197c   :  { %3859 = vadd.xlane.f32.xlu0 %v3858_v42  ;;  %v3855_v43 = vsel %vm200_vm3, %v3853_v45, 0.0  ;;  %4875 = vmatpush3.bf16.msra.mxu0 %v4872_v26 }
0x197d   :  { %3856 = vadd.xlane.f32.xlu1 %v3855_v43  ;;  %p5111_p7 = por %p5110_p6, %p5109_p5 }
0x197f   :  { %p5112_p8 = pnand %p5111_p7, %p5105_p4 }
0x1a09   :  { %v3860_v46 = vpop.xlane.xlu0 %3859 }
0x1a0a   :  { %v3862_v62 = vmul.f32 0.032258064, %v3860_v46  ;;  %v3857_v13 = vpop.xlane.xlu1 %3856 }
0x1a0b   :  { %v3861_v0 = vmul.f32 0.032258064, %v3857_v13 }
0x1a0c   :  { %4999 = vrsqrt.f32 %v3862_v62  ;;  %vm3872_vm8 = vcmp.eq.f32.partialorder %v3862_v62, inf  ;;  %v3875_v8 = vand.u32 2147483648, %v3862_v62  ;;  %vm3874_vm13 = vcmp.eq.f32.partialorder %v3862_v62, 0.0 }
0x1a0d   :  { %5001 = vrsqrt.f32 %v3861_v0  ;;  %vm3865_vm14 = vcmp.eq.f32.partialorder %v3861_v0, inf  ;;  %v3868_v29 = vand.u32 2147483648, %v3861_v0  ;;  %vm3867_vm15 = vcmp.eq.f32.partialorder %v3861_v0, 0.0 }
0x1a16   :  { %v5000_v6 = vpop.eup %4999 }
0x1a17   :  { %v5002_v7 = vpop.eup %5001  ;;  %v3871_v40 = vmul.f32 %v5000_v6, %v3862_v62 }
0x1a18   :  { %v3864_v9 = vmul.f32 %v5002_v7, %v3861_v0 }
0x1a19   :  { %v3873_v10 = vsel %vm3872_vm8, %v3862_v62, %v3871_v40 }
0x1a1a   :  { %v3876_v50 = vsel %vm3874_vm13, %v3875_v8, %v3873_v10  ;;  %v3866_v12 = vsel %vm3865_vm14, %v3861_v0, %v3864_v9 }
0x1a1b   :  { %v3878_v28 = vadd.f32 1e-06, %v3876_v50  ;;  %v3869_v14 = vsel %vm3867_vm15, %v3868_v29, %v3866_v12 }
0x1a1c   :  { %v3877_v16 = vadd.f32 1e-06, %v3869_v14 }
0x1a1d   :  { %5003 = vrcp.f32 %v3878_v28  ;;  %v4126_v28 = vrot.slane %v5882_v19, %v5331_v4 }
0x1a1e   :  { %5005 = vrcp.f32 %v3877_v16 }
0x1a27   :  { %v5004_v22 = vpop.eup %5003 }
0x1a28   :  { %v5006_v25 = vpop.eup %5005  ;;  %v3882_v32 = vmul.f32 %v5004_v22, %v5853_v39 }
0x1a29   :  { %v3880_v15 = vmul.f32 %v5006_v25, %v5855_v41  ;;  %v3999_v41 = vrot.slane %v5882_v19, %v1970_v5 }
0x1a2a   :  { %v3888_v31 = vmul.f32 %v3886_v21, %v3882_v32 }
0x1a2b   :  { %v3887_v27 = vmul.f32 %v3886_v21, %v3880_v15 }
0x1a2c   :  { %v3894_v11 = vadd.f32 %v3892_v47, %v3888_v31 }
0x1a2d   :  { %v3893_v18 = vadd.f32 %v3892_v47, %v3887_v27 }
0x1a2f   :  { %4730 = vmatprep.mubr.msk.f32.mxu1 %vm200_vm3, %v3893_v18 }
0x1a30   :  { %4731 = vmatmul.mubr.msk.f32.vlgmr.msra.gmra.mrb[36].mxu1 %vm200_vm3, %v3894_v11 }
0x1b03   :  { %v4732_v33 = vpop.f32.mrb[36].mxu1 }
0x1b04   :  { %v3982_v34 = vadd.f32 %v4732_v33, %v3903_v2  ;;  %v3976_v37 = vpop.f32.mrb[37].mxu1 }
0x1b05   :  { %v3977_v38 = vadd.f32 %v3976_v37, %v3903_v2 }
0x1b06   :  { %v3986_v39 = vmax.f32 %v3982_v34, 0.0 }
0x1b07   :  { %v3985_v35 = vmax.f32 %v3977_v38, 0.0 }
0x1b09   :  { %4749 = vmatprep.mubr.msk.f32.mxu0 %vm2077_vm12, %v3985_v35 }
0x1b0a   :  { %4750 = vmatmul.mubr.msk.f32.vlgmr.msra.gmra.mrb[26].mxu0 %vm2077_vm12, %v3986_v39 }
0x1bdd   :  { %v4751_v49 = vpop.f32.mrb[26].mxu0 }
0x1bde   :  { %v4078_v45 = vadd.f32 %v4751_v49, %v3999_v41  ;;  %v4072_v42 = vpop.f32.mrb[27].mxu0 }
0x1bdf   :  { %v4073_v43 = vadd.f32 %v4072_v42, %v3999_v41 }
0x1be0   :  { %v4082_v44 = vadd.f32 %v4078_v45, %v3894_v11 }
0x1be1   :  { %v4081_v24 = vadd.f32 %v4073_v43, %v3893_v18 }
0x1be2   :  { %v4086_v51 = vsel %vm200_vm3, %v4082_v44, 0.0 }
0x1be3   :  { %4087 = vadd.xlane.f32.xlu0 %v4086_v51  ;;  %v4083_v55 = vsel %vm200_vm3, %v4081_v24, 0.0 }
0x1be4   :  { %4084 = vadd.xlane.f32.xlu1 %v4083_v55 }
0x1c70   :  { %v4088_v56 = vpop.xlane.xlu0 %4087 }
0x1c71   :  { %v4090_v48 = vmul.f32 0.03125, %v4088_v56  ;;  %v4085_v52 = vpop.xlane.xlu1 %4084 }
0x1c72   :  { %v4089_v54 = vmul.f32 0.03125, %v4085_v52 }
0x1c73   :  { %v4092_v57 = vsub.f32 %v4082_v44, %v4090_v48 }
0x1c74   :  { %v4091_v53 = vsub.f32 %v4081_v24, %v4089_v54 }
0x1c75   :  { %v4094_v58 = vmul.f32 %v4092_v57, %v4092_v57 }
0x1c76   :  { %v4093_v5 = vmul.f32 %v4091_v53, %v4091_v53 }
0x1c77   :  { %v4098_v59 = vsel %vm200_vm3, %v4094_v58, 0.0 }
0x1c78   :  { %4099 = vadd.xlane.f32.xlu0 %v4098_v59  ;;  %v4095_v3 = vsel %vm200_vm3, %v4093_v5, 0.0 }
0x1c79   :  { %4096 = vadd.xlane.f32.xlu1 %v4095_v3 }
0x1d05   :  { %v4100_v60 = vpop.xlane.xlu0 %4099 }
0x1d06   :  { %v4102_v61 = vmul.f32 0.032258064, %v4100_v60  ;;  %v4097_v23 = vpop.xlane.xlu1 %4096 }
0x1d07   :  { %v4101_v46 = vmul.f32 0.032258064, %v4097_v23 }
0x1d08   :  { %5007 = vrsqrt.f32 %v4102_v61  ;;  %vm4112_vm5 = vcmp.eq.f32.partialorder %v4102_v61, inf  ;;  %v4115_v6 = vand.u32 2147483648, %v4102_v61  ;;  %vm4114_vm6 = vcmp.eq.f32.partialorder %v4102_v61, 0.0 }
0x1d09   :  { %5009 = vrsqrt.f32 %v4101_v46  ;;  %vm4105_vm7 = vcmp.eq.f32.partialorder %v4101_v46, inf  ;;  %v4108_v8 = vand.u32 2147483648, %v4101_v46  ;;  %vm4107_vm9 = vcmp.eq.f32.partialorder %v4101_v46, 0.0 }
0x1d12   :  { %v5008_v62 = vpop.eup %5007 }
0x1d13   :  { %v5010_v13 = vpop.eup %5009  ;;  %v4111_v0 = vmul.f32 %v5008_v62, %v4102_v61 }
0x1d14   :  { %v4104_v7 = vmul.f32 %v5010_v13, %v4101_v46 }
0x1d15   :  { %v4113_v40 = vsel %vm4112_vm5, %v4102_v61, %v4111_v0 }
0x1d16   :  { %v4116_v9 = vsel %vm4114_vm6, %v4115_v6, %v4113_v40  ;;  %v4106_v10 = vsel %vm4105_vm7, %v4101_v46, %v4104_v7 }
0x1d17   :  { %v4118_v29 = vadd.f32 1e-06, %v4116_v9  ;;  %v4109_v50 = vsel %vm4107_vm9, %v4108_v8, %v4106_v10 }
0x1d18   :  { %v4117_v12 = vadd.f32 1e-06, %v4109_v50 }
0x1d19   :  { %5011 = vrcp.f32 %v4118_v29 }
0x1d1a   :  { %5013 = vrcp.f32 %v4117_v12 }
0x1d23   :  { %v5012_v14 = vpop.eup %5011 }
0x1d24   :  { %v5014_v16 = vpop.eup %5013  ;;  %v4122_v17 = vmul.f32 %v5012_v14, %v4092_v57 }
0x1d25   :  { %v4120_v21 = vmul.f32 %v5014_v16, %v4091_v53 }
0x1d26   :  { %v4128_v22 = vmul.f32 %v4126_v28, %v4122_v17 }
0x1d27   :  { %v4127_v25 = vmul.f32 %v4126_v28, %v4120_v21 }
0x1d28   :  { %v4134_v32 = vadd.f32 %v4132_v20, %v4128_v22 }
0x1d29   :  { %v4133_v15 = vadd.f32 %v4132_v20, %v4127_v25 }
0x1d2a   :  { %4136 = vst.msk [vmem:[#allocation10 + $0x8] sm:$0xff] %vm200_vm3, %v4134_v32 }
0x1d2b   :  { %4135 = vst.msk [vmem:[#allocation10] sm:$0xff] %vm200_vm3, %v4133_v15 }
0x1d2c   :  { %5115 = shalt.err (!%p5112_p8)
}
0x1d2d   :  { %s5116_s0 = scalar_lea.hbm %s5938_s9, 256 }
0x1d2e   :  { %p5117_p9 = scmp.ne.s32.totalorder %s5938_s9, %s5116_s0  ;;  %p5120_p10 = scmp.lt.u32.totalorder %s5116_s0, %s5938_s9 }
0x1d30   :  { %p5122_p11 = pnand %p5120_p10, %p5117_p9 }
0x1d32   :  { %5125 = shalt.err (!%p5122_p11)
}
0x1d33   :  { %4148 = dma.vmem_to_hbm [thread:$0]  %s4143_s29, 256, %s5938_s9, [#allocation4], %s5136_s21, %s5136_s21, %s5137_s22  }
0x1d34   :  { %5132 = dma.done.wait [#allocation4], 256  }
0x1d35   :  { %5133 = vsyncadd [#allocation4], 4294967040 }
0x1d36   :  { %4152 = vsyncpa [#allocation3], 1 }
0x1d37   :  { %4153 = vsyncpa [#allocation6], 1 }
0x1d38   :  { %4154 = vsyncpa [#allocation9], 1 }
0x1d39   :  { %4155 = vsyncpa [#allocation4], 1 }

</bundles_post_ra>
